<compile_context>
chip_gen: v7x
topology: tpu7x:2x2x1
jax: 0.10.0
libtpu: 0.0.40
codegen_flags: <defaults>
</compile_context>

<pallas_src>
import jax
import jax.numpy as jnp
from jax.experimental import pallas as pl
from jax.experimental.pallas import tpu as pltpu


# ----------------------------------------------------------------------------
# Pallas kernel: fused trunk + detection head
#   fused = X @ Wt + bt            (X: (tm, T*C) bf16,  Wt: (T*C, 512) bf16)
#   det   = fused @ Wd + bd        (Wd: (512, 128) bf16, zero-padded cols)
# f32 accumulation throughout; f32 outputs.
# ----------------------------------------------------------------------------
def _trunk_det_kernel(x_ref, wt_ref, bt_ref, wd_ref, bd_ref, fused_ref, det_ref):
    fused = jnp.dot(x_ref[...], wt_ref[...],
                    preferred_element_type=jnp.float32) + bt_ref[...]
    det = jnp.dot(fused.astype(jnp.bfloat16), wd_ref[...],
                  preferred_element_type=jnp.float32) + bd_ref[...]
    fused_ref[...] = fused.astype(fused_ref.dtype)
    det_ref[...] = det.astype(det_ref.dtype)


def _pick_tm(m):
    # Large tiles amortize the ~0.35us/step overhead, but keep >=2 grid steps
    # whenever possible so dual-TC chips (v7x) can split the parallel axis.
    for tm in (512, 256, 128, 64, 32, 16, 8):
        if m >= 2 * tm:
            return tm
    return 8


def trunk_det(x_rows, w_trunk, b_trunk, w_det, b_det):
    """x_rows: (M, K) f32; w_trunk: (K, F); w_det: (F, Nd) (Nd % 128 == 0)."""
    M, K = x_rows.shape
    F = w_trunk.shape[1]
    Nd = w_det.shape[1]

    tm = _pick_tm(M)
    Mp = -(-M // tm) * tm
    if Mp != M:
        x_rows = jnp.pad(x_rows, ((0, Mp - M), (0, 0)))
    grid = (Mp // tm,)

    fused, det = pl.pallas_call(
        _trunk_det_kernel,
        out_shape=(
            jax.ShapeDtypeStruct((Mp, F), jnp.float32),
            jax.ShapeDtypeStruct((Mp, Nd), jnp.float32),
        ),
        grid_spec=pltpu.PrefetchScalarGridSpec(
            num_scalar_prefetch=0,
            grid=grid,
            in_specs=[
                pl.BlockSpec((tm, K), lambda i: (i, 0)),
                pl.BlockSpec((K, F), lambda i: (0, 0)),
                pl.BlockSpec((1, F), lambda i: (0, 0)),
                pl.BlockSpec((F, Nd), lambda i: (0, 0)),
                pl.BlockSpec((1, Nd), lambda i: (0, 0)),
            ],
            out_specs=(
                pl.BlockSpec((tm, F), lambda i: (i, 0)),
                pl.BlockSpec((tm, Nd), lambda i: (i, 0)),
            ),
        ),
        compiler_params=pltpu.CompilerParams(
            dimension_semantics=("parallel",),
        ),
    )(
        x_rows.astype(jnp.bfloat16),
        w_trunk.astype(jnp.bfloat16),
        b_trunk.reshape(1, F).astype(jnp.float32),
        w_det.astype(jnp.bfloat16),
        b_det.reshape(1, Nd).astype(jnp.float32),
    )
    return fused[:M], det[:M]


# ----------------------------------------------------------------------------
# Parameter construction (deterministic, synthetic)
# ----------------------------------------------------------------------------
def init_params(key, c_in, t, num_classes, num_anchors):
    ks = jax.random.split(key, 8)
    f = 512  # each backbone emits 512 channels (concat -> 1024)

    def init(k, shape, fan_in):
        return (jax.random.normal(k, shape, jnp.float32)
                / jnp.sqrt(fan_in)).astype(jnp.float32)

    det_out = num_anchors * (5 + num_classes)
    return {
        # YOLOBackbone ~ pointwise conv C_in -> 512
        "bb2d_w": init(ks[0], (c_in, f), c_in),
        "bb2d_b": jnp.zeros((f,), jnp.float32),
        # I3DBackbone ~ conv3d kernel (T,1,1), C_in -> 512 (T squeezed to 1)
        "bb3d_w": init(ks[1], (t * c_in, f), t * c_in),
        "bb3d_b": jnp.zeros((f,), jnp.float32),
        # fusion_layer: Conv2d(1024, 512, kernel_size=1)
        "fuse_w": init(ks[2], (2 * f, f), 2 * f),
        "fuse_b": jnp.zeros((f,), jnp.float32),
        # DetectionHead(512, num_anchors, num_classes): 1x1 conv
        "det_w": init(ks[3], (f, det_out), f),
        "det_b": jnp.zeros((det_out,), jnp.float32),
        # ClassificationHead(512, num_classes): linear
        "cls_w": init(ks[4], (f, num_classes), f),
        "cls_b": jnp.zeros((num_classes,), jnp.float32),
    }


# ----------------------------------------------------------------------------
# Forward pass
# ----------------------------------------------------------------------------
def yowov3_forward(params, x):
    """x: (B, C, T, H, W) float32 (PyTorch NCDHW video layout)."""
    B, C, T, H, W = x.shape
    F = 512
    det_out = params["det_w"].shape[1]

    # Single input layout transform: NCDHW -> (B, H, W, T, C) -> rows.
    x_rows = jnp.transpose(x, (0, 3, 4, 2, 1)).reshape(B * H * W, T * C)

    # ---- fold the all-linear trunk into one (T*C, F) matmul (exact) --------
    w2d_rep = jnp.tile(params["bb2d_w"], (T, 1)) / T                 # (T*C, F)
    wf_top, wf_bot = params["fuse_w"][:F], params["fuse_w"][F:]
    w_trunk = w2d_rep @ wf_top + params["bb3d_w"] @ wf_bot           # (T*C, F)
    b_trunk = (params["bb2d_b"] @ wf_top
               + params["bb3d_b"] @ wf_bot
               + params["fuse_b"])                                   # (F,)

    # ---- pad detection head to a lane-dense (multiple-of-128) width --------
    n_pad = -(-det_out // 128) * 128
    w_det = jnp.pad(params["det_w"], ((0, 0), (0, n_pad - det_out)))
    b_det = jnp.pad(params["det_b"], (0, n_pad - det_out))

    # ---- one fused Pallas kernel: trunk matmul + detection head ------------
    fused, det_padded = trunk_det(x_rows, w_trunk, b_trunk, w_det, b_det)
    fused = fused.reshape(B, H, W, F)
    det = det_padded[:, :det_out].reshape(B, H, W, det_out)
    boxes = jnp.transpose(det, (0, 3, 1, 2))       # NCHW to match PyTorch

    # ---- classification head on spatially pooled features (tiny -> jnp) ----
    pooled = fused.mean(axis=(1, 2))                       # (B, F)
    action = pooled @ params["cls_w"] + params["cls_b"]    # (B, num_classes)

    return boxes, action


# ----------------------------------------------------------------------------
if __name__ == "__main__":
    num_classes = 8
    num_anchors = 3
    B, C, T, H, W = 2, 3, 4, 16, 16

    key = jax.random.PRNGKey(0)
    kx, kp = jax.random.split(key)
    x = jax.random.normal(kx, (B, C, T, H, W), jnp.float32)
    params = init_params(kp, C, T, num_classes, num_anchors)

    boxes, action = jax.jit(yowov3_forward)(params, x)
    jax.block_until_ready((boxes, action))

    assert boxes.shape == (B, num_anchors * (5 + num_classes), H, W), boxes.shape
    assert action.shape == (B, num_classes), action.shape
    assert bool(jnp.isfinite(boxes).all()) and bool(jnp.isfinite(action).all())
    print("KERNEL_OK")
</pallas_src>

<mosaic_0001>
module attributes {stable_mosaic.version = 11 : i64} {
  func.func @_trunk_det_kernel(%arg0: i32, %arg1: memref<256x12xbf16, #tpu.memory_space<vmem>>, %arg2: memref<12x512xbf16, #tpu.memory_space<vmem>>, %arg3: memref<1x512xf32, #tpu.memory_space<vmem>>, %arg4: memref<512x128xbf16, #tpu.memory_space<vmem>>, %arg5: memref<1x128xf32, #tpu.memory_space<vmem>>, %arg6: memref<256x512xf32, #tpu.memory_space<vmem>>, %arg7: memref<256x128xf32, #tpu.memory_space<vmem>>) attributes {dimension_semantics = [#tpu.dimension_semantics<parallel>], iteration_bounds = array<i64: 2>, scalar_prefetch = 0 : i64, scratch_operands = 0 : i64, tpu.core_type = #tpu.core_type<tc>, window_params = [{transform_indices = @transform_0, window_bounds = array<i64: 256, 12>}, {pipeline_mode = #tpu.pipeline_mode<synchronous>, transform_indices = @transform_1, window_bounds = array<i64: 12, 512>}, {pipeline_mode = #tpu.pipeline_mode<synchronous>, transform_indices = @transform_2, window_bounds = array<i64: 1, 512>}, {pipeline_mode = #tpu.pipeline_mode<synchronous>, transform_indices = @transform_3, window_bounds = array<i64: 512, 128>}, {pipeline_mode = #tpu.pipeline_mode<synchronous>, transform_indices = @transform_4, window_bounds = array<i64: 1, 128>}, {transform_indices = @transform_5, window_bounds = array<i64: 256, 512>}, {transform_indices = @transform_6, window_bounds = array<i64: 256, 128>}]} {
    %c0 = arith.constant 0 : index
    %c0_0 = arith.constant 0 : index
    %0 = vector.load %arg1[%c0, %c0_0] : memref<256x12xbf16, #tpu.memory_space<vmem>>, vector<256x12xbf16>
    %c0_1 = arith.constant 0 : index
    %c0_2 = arith.constant 0 : index
    %1 = vector.load %arg2[%c0_1, %c0_2] : memref<12x512xbf16, #tpu.memory_space<vmem>>, vector<12x512xbf16>
    %cst = arith.constant dense<0.000000e+00> : vector<256x512xf32>
    %2 = tpu.matmul %0, %1, %cst {dimension_numbers = #tpu.dot_dimension_numbers<[1], [0], [0], [1], [0, 0, 1, 1], [], []>} : vector<256x12xbf16>, vector<12x512xbf16>, vector<256x512xf32> -> vector<256x512xf32>
    %c0_3 = arith.constant 0 : index
    %c0_4 = arith.constant 0 : index
    %3 = vector.load %arg3[%c0_3, %c0_4] : memref<1x512xf32, #tpu.memory_space<vmem>>, vector<1x512xf32>
    %4 = vector.broadcast %3 : vector<1x512xf32> to vector<256x512xf32>
    %5 = arith.addf %2, %4 : vector<256x512xf32>
    %6 = arith.truncf %5 : vector<256x512xf32> to vector<256x512xbf16>
    %c0_5 = arith.constant 0 : index
    %c0_6 = arith.constant 0 : index
    %7 = vector.load %arg4[%c0_5, %c0_6] : memref<512x128xbf16, #tpu.memory_space<vmem>>, vector<512x128xbf16>
    %cst_7 = arith.constant dense<0.000000e+00> : vector<256x128xf32>
    %8 = tpu.matmul %6, %7, %cst_7 {dimension_numbers = #tpu.dot_dimension_numbers<[1], [0], [0], [1], [0, 0, 1, 1], [], []>} : vector<256x512xbf16>, vector<512x128xbf16>, vector<256x128xf32> -> vector<256x128xf32>
    %c0_8 = arith.constant 0 : index
    %c0_9 = arith.constant 0 : index
    %9 = vector.load %arg5[%c0_8, %c0_9] : memref<1x128xf32, #tpu.memory_space<vmem>>, vector<1x128xf32>
    %10 = vector.broadcast %9 : vector<1x128xf32> to vector<256x128xf32>
    %11 = arith.addf %8, %10 : vector<256x128xf32>
    %c0_10 = arith.constant 0 : index
    %c0_11 = arith.constant 0 : index
    %12 = vector.load %arg6[%c0_10, %c0_11] : memref<256x512xf32, #tpu.memory_space<vmem>>, vector<256x512xf32>
    tpu.vector_store %arg6[%c0_10, %c0_11], %5 {strides = array<i32>} : memref<256x512xf32, #tpu.memory_space<vmem>>, vector<256x512xf32>,
    %c0_12 = arith.constant 0 : index
    %c0_13 = arith.constant 0 : index
    %13 = vector.load %arg7[%c0_12, %c0_13] : memref<256x128xf32, #tpu.memory_space<vmem>>, vector<256x128xf32>
    tpu.vector_store %arg7[%c0_12, %c0_13], %11 {strides = array<i32>} : memref<256x128xf32, #tpu.memory_space<vmem>>, vector<256x128xf32>,
    return
  }
  func.func @transform_0(%arg0: i32) -> (i32, i32) {
    %c0_i32 = arith.constant 0 : i32
    %c0_i32_0 = arith.constant 0 : i32
    return %arg0, %c0_i32 : i32, i32
  }
  func.func @transform_1(%arg0: i32) -> (i32, i32) {
    %c0_i32 = arith.constant 0 : i32
    %c0_i32_0 = arith.constant 0 : i32
    %c0_i32_1 = arith.constant 0 : i32
    return %c0_i32, %c0_i32_0 : i32, i32
  }
  func.func @transform_2(%arg0: i32) -> (i32, i32) {
    %c0_i32 = arith.constant 0 : i32
    %c0_i32_0 = arith.constant 0 : i32
    %c0_i32_1 = arith.constant 0 : i32
    return %c0_i32, %c0_i32_0 : i32, i32
  }
  func.func @transform_3(%arg0: i32) -> (i32, i32) {
    %c0_i32 = arith.constant 0 : i32
    %c0_i32_0 = arith.constant 0 : i32
    %c0_i32_1 = arith.constant 0 : i32
    return %c0_i32, %c0_i32_0 : i32, i32
  }
  func.func @transform_4(%arg0: i32) -> (i32, i32) {
    %c0_i32 = arith.constant 0 : i32
    %c0_i32_0 = arith.constant 0 : i32
    %c0_i32_1 = arith.constant 0 : i32
    return %c0_i32, %c0_i32_0 : i32, i32
  }
  func.func @transform_5(%arg0: i32) -> (i32, i32) {
    %c0_i32 = arith.constant 0 : i32
    %c0_i32_0 = arith.constant 0 : i32
    return %arg0, %c0_i32 : i32, i32
  }
  func.func @transform_6(%arg0: i32) -> (i32, i32) {
    %c0_i32 = arith.constant 0 : i32
    %c0_i32_0 = arith.constant 0 : i32
    return %arg0, %c0_i32 : i32, i32
  }
}

</mosaic_0001>

<bundles_post_ra>
// kernel: yowov3_forward.1
= control target key start
LH: loop header
LB: loop body
LE: loop exit
PB: predicated region body
PF: predicated region fallthrough
CT: control target
= control target key end

     0   :  { %12 = vsyncpa [#allocation3], 0  ;;  %s2964_s0 = inlined_call_operand.vmem [shape: bf16[512,12], index: 0, kind: input, shape index: {}]   ;;  %s2965_s1 = inlined_call_operand.vmem [shape: bf16[12,512], index: 1, kind: input, shape index: {}]   ;;  %s2966_s2 = inlined_call_operand.vmem [shape: f32[1,512], index: 2, kind: input, shape index: {}]   ;;  %s2967_s3 = inlined_call_operand.vmem [shape: bf16[512,128], index: 3, kind: input, shape index: {}]   ;;  %s2968_s4 = inlined_call_operand.vmem [shape: f32[1,128], index: 4, kind: input, shape index: {}]   ;;  %s2969_s5 = inlined_call_operand.vmem [shape: f32[512,512], index: 5, kind: output, shape index: {0}]   ;;  %s2970_s6 = inlined_call_operand.hbm [shape: f32[512,128], index: 6, kind: output, shape index: {1}]  }
   0x1   :  { %14 = vsyncpa [#allocation3 + $0x1], 0  ;;  %s2320_s21 = smov 0   ;;  %s2322_s22 = smov 0  }
   0x2   :  { %s2324_s23 = smov 0   ;;  %s2326_s24 = smov 0  }
   0x3 LB: > { %s2341_s25 = sadd.s32 4294967295, %s2279_s24   ;;  %s1793_s26 = sadd.s32 4294967294, %s2279_s24   ;;  %s2279_s24 = sphi %s2326_s24, %s2976_s24   ;;  %s2275_s23 = sphi %s2324_s23, %s2975_s23   ;;  %s2271_s22 = sphi %s2322_s22, %s2974_s22   ;;  %s2267_s21 = sphi %s2320_s21, %s2973_s21  }
   0x4   : > { %s2345_s27 = sadd.s32 1, %s2279_s24   ;;  %s163_s28 = sadd.s32 1, %s2275_s23 }
   0x5   : > { %s160_s29 = ssub.s32 %s2279_s24, %s2345_s27  ;;  %p173_p0 = scmp.ne.s32.totalorder %s2275_s23, %s2271_s22 }
   0x6   : > { %p161_p1 = scmp.eq.s32.totalorder %s160_s29, 0  ;;  %p174_p2 = scmp.eq.s32.totalorder %s2341_s25, 1 }
   0x7   : > { %p179_p3 = scmp.ne.s32.totalorder %s2271_s22, %s2267_s21  ;;  %p180_p4 = scmp.eq.s32.totalorder %s1793_s26, 1 }
   0x8   : > { %s2356_s30 = scalar_select %p161_p1, %s2275_s23, %s163_s28  }
   0x9   : > { %p2358_p5 = por %p174_p2, %p173_p0  ;;  %p2362_p6 = por %p180_p4, %p179_p3 }
   0xa   : > { %p1796_p7 = scmp.ge.s32.totalorder %s2279_s24, 1  ;;  %p219_p8 = scmp.lt.s32.totalorder %s2279_s24, 3 }
   0xc   : > { %p220_p9 = pnand %p1796_p7, %p219_p8 }
   0xd   : > { %v2163_v0 = vld [vmem:[%s2965_s1 + $0x4] ss:$16 sps:$4 sm:$0x3f] (!%p220_p9)   ;;  %vm473_vm0 = vcmask (!%p220_p9), 1045504   ;;  %s1798_s11 = sshll.u32 (!%p220_p9), %s2341_s25, 5  ;;  %v2281_v3 = vmov (!%p220_p9), 0   ;;  %v308_v55 = vlaneseq (!%p220_p9) }
   0xe   : > { %223 = sbr.rel (%p220_p9) target bundleno = 601 (0x259), region = 40  ;;  %1823 = vmatprep.subr.msk.bf16.mxu0 (!%p220_p9), %vm473_vm0, %v2163_v0  ;;  %v2165_v1 = vld [vmem:[%s2965_s1 + $0xc] ss:$16 sps:$4 sm:$0x3f] (!%p220_p9)   ;;  %518 = vmatprep.mubr.bf16.mxu0 (!%p220_p9), %v2281_v3  ;;  %p256_p10 = scmp.lt.s32.totalorder (!%p220_p9), %s1798_s11, 63  ;;  %v2181_v5 = vld [vmem:[%s2967_s3 + $0x40] sm:$0xff] (!%p220_p9)  }
   0xf   : > { %v2167_v2 = vld [vmem:[%s2965_s1] ss:$16 sps:$4 sm:$0x3f] (!%p220_p9)   ;;  %v2168_v4 = vld [vmem:[%s2965_s1 + $0x8] ss:$16 sps:$4 sm:$0x3f] (!%p220_p9)   ;;  %711 = vmatprep.mubr.bf16.mxu1 (!%p220_p9), %v2281_v3  ;;  %1840 = vmatprep.subr.msk.bf16.mxu1 (!%p220_p9), %vm473_vm0, %v2165_v1 }
  0x10   : > { %v475_v6 = vsel (!%p220_p9), %vm473_vm0, %v2167_v2, 0  ;;  %v481_v7 = vsel (!%p220_p9), %vm473_vm0, %v2168_v4, 0  ;;  %v2183_v8 = vld [vmem:[%s2967_s3 + $0xc0] sm:$0xff] (!%p220_p9)   ;;  %vm424_vm1 = vcmask (!%p220_p9), 97280   ;;  %v2187_v14 = vld [vmem:[%s2967_s3 + $0x48] sm:$0xff] (!%p220_p9)   ;;  %v2193_v19 = vld [vmem:[%s2967_s3 + $0x50] sm:$0xff] (!%p220_p9)  }
  0x11   : > { %487 = vmatpush1.bf16.msra.mxu0 (!%p220_p9), %v475_v6  ;;  %680 = vmatpush1.bf16.msra.mxu1 (!%p220_p9), %v481_v7  ;;  %v2182_v9 = vld [vmem:[%s2967_s3] sm:$0xff] (!%p220_p9)   ;;  %v2188_v15 = vld [vmem:[%s2967_s3 + $0x8] sm:$0xff] (!%p220_p9)   ;;  %v2194_v20 = vld [vmem:[%s2967_s3 + $0x10] sm:$0xff] (!%p220_p9)   ;;  %v309_v56 = vshrl.u32 (!%p220_p9), %v308_v55, 7  ;;  %s1896_s16 = sshll.u32 (!%p220_p9), %s2341_s25, 12 }
  0x12   : > { %1897 = vmatprep.subr.bf16.mxu0 (!%p220_p9), %v2181_v5  ;;  %2009 = vmatprep.subr.bf16.mxu1 (!%p220_p9), %v2183_v8  ;;  %v2184_v10 = vld [vmem:[%s2967_s3 + $0x80] sm:$0xff] (!%p220_p9)   ;;  %v2189_v16 = vld [vmem:[%s2967_s3 + $0xc8] sm:$0xff] (!%p220_p9)   ;;  %v2195_v21 = vld [vmem:[%s2967_s3 + $0xd0] sm:$0xff] (!%p220_p9)   ;;  %s2915_s20 = scalar_lea.hbm (!%p220_p9), %s2970_s6, %s1896_s16 }
  0x13   : > { %v2190_v17 = vld [vmem:[%s2967_s3 + $0x88] sm:$0xff] (!%p220_p9)   ;;  %v2196_v22 = vld [vmem:[%s2967_s3 + $0x90] sm:$0xff] (!%p220_p9)   ;;  %v2197_v23 = vld [vmem:[%s2967_s3 + $0x58] sm:$0xff] (!%p220_p9)   ;;  %v310_v57 = vsub.s32 (!%p220_p9), 0, %v309_v56  ;;  %v318_v58 = vsub.s32 (!%p220_p9), 2, %v309_v56  ;;  %v314_v60 = vsub.s32 (!%p220_p9), 1, %v309_v56 }
  0x14   : > { %v2198_v24 = vld [vmem:[%s2967_s3 + $0x18] sm:$0xff] (!%p220_p9)   ;;  %v2201_v28 = vld [vmem:[%s2967_s3 + $0x60] sm:$0xff] (!%p220_p9)   ;;  %v2205_v32 = vld [vmem:[%s2967_s3 + $0x68] sm:$0xff] (!%p220_p9)   ;;  %v322_v61 = vsub.s32 (!%p220_p9), 3, %v309_v56 }
  0x15   : > { %s2978_s11 = smov (!%p256_p10, %s1798_s11), 63  ;;  %v2199_v25 = vld [vmem:[%s2967_s3 + $0xd8] sm:$0xff]   ;;  %v2202_v29 = vld [vmem:[%s2967_s3 + $0x20] sm:$0xff]   ;;  %v2206_v33 = vld [vmem:[%s2967_s3 + $0x28] sm:$0xff]  }
  0x16   : > { %s1799_s28 = sshll.u32 %s2978_s11, 2  ;;  %v2200_v26 = vld [vmem:[%s2967_s3 + $0x98] sm:$0xff]   ;;  %v2203_v30 = vld [vmem:[%s2967_s3 + $0xe0] sm:$0xff]   ;;  %v2207_v34 = vld [vmem:[%s2967_s3 + $0xe8] sm:$0xff]  }
  0x17   : > { %s2398_s13 = scalar_lea.vmem %s2964_s0, %s1799_s28  ;;  %v2204_v31 = vld [vmem:[%s2967_s3 + $0xa0] sm:$0xff]   ;;  %v2208_v35 = vld [vmem:[%s2967_s3 + $0xa8] sm:$0xff]   ;;  %v2209_v37 = vld [vmem:[%s2967_s3 + $0x70] sm:$0xff]   ;;  %s1895_s28 = sshll.u32 %s2978_s11, 5 }
  0x18   : > { %v2169_v11 = vld [vmem:[%s2398_s13] sm:$0xff]   ;;  %v2170_v12 = vld [vmem:[%s2398_s13 + $0x8] sm:$0xff]   ;;  %v2171_v13 = vld [vmem:[%s2398_s13 + $0x10] sm:$0xff]   ;;  %s2580_s9 = scalar_lea.vmem %s2969_s5, %s1895_s28  ;;  %s252_s11 = sand.u32 1, %s2271_s22  }
  0x19   : > { %1824 = vmatmul.mubr.msk.bf16.vlgmr.msra.gmra.mrb[0].mxu0 %vm424_vm1, %v2169_v11  ;;  %1841 = vmatmul.mubr.msk.bf16.vlgmr.msra.gmra.mrb[0].mxu1 %vm424_vm1, %v2169_v11  ;;  %v2172_v18 = vld [vmem:[%s2398_s13 + $0x18] sm:$0xff]   ;;  %v2173_v27 = vld [vmem:[%s2398_s13 + $0x20] sm:$0xff]   ;;  %v2174_v36 = vld [vmem:[%s2398_s13 + $0x28] sm:$0xff]   ;;  %s1797_s14 = sshll.u32 %s252_s11, 8  ;;  %s2923_s26 = scalar_lea.sflag [#allocation3], %s252_s11 }
  0x1a   : > { %528 = vmatprep.mubr.bf16.mxu0 %v2281_v3  ;;  %721 = vmatprep.mubr.bf16.mxu1 %v2281_v3  ;;  %v2210_v38 = vld [vmem:[%s2967_s3 + $0x30] sm:$0xff]   ;;  %v2213_v41 = vld [vmem:[%s2967_s3 + $0x78] sm:$0xff]   ;;  %v2177_v47 = vld [vmem:[%s2398_s13 + $0x40] sm:$0xff]   ;;  %s2848_s15 = scalar_lea.vmem [#allocation2], %s1797_s14  ;;  %s2282_s28 = smov [#allocation2]  }
  0x1b   : > { %1898 = vmatpush3.bf16.msra.mxu0 %v2182_v9  ;;  %2010 = vmatpush3.bf16.msra.mxu1 %v2184_v10  ;;  %v2211_v39 = vld [vmem:[%s2967_s3 + $0xf0] sm:$0xff]   ;;  %v2214_v42 = vld [vmem:[%s2967_s3 + $0x38] sm:$0xff]   ;;  %v2178_v48 = vld [vmem:[%s2398_s13 + $0x48] sm:$0xff]   ;;  %s1705_s17 = sshll.u32 %s2848_s15, 4  ;;  %s2917_s17 = int_to_ptr.vmem [resolvable:$true] %s1705_s17 }
  0x1c   : > { %1899 = vmatprep.subr.bf16.mxu0 %v2187_v14  ;;  %2011 = vmatprep.subr.bf16.mxu1 %v2189_v16  ;;  %v2212_v40 = vld [vmem:[%s2967_s3 + $0xb0] sm:$0xff]   ;;  %v2215_v43 = vld [vmem:[%s2967_s3 + $0xf8] sm:$0xff]   ;;  %v2185_v51 = vld [vmem:[%s2398_s13 + $0x60] sm:$0xff]   ;;  %s2217_s25 = scalar_lea.vmem %s2917_s17, 4096 }
  0x1d   : > { %v2216_v44 = vld [vmem:[%s2967_s3 + $0xb8] sm:$0xff]   ;;  %v2175_v45 = vld [vmem:[%s2398_s13 + $0x30] sm:$0xff]   ;;  %v2186_v52 = vld [vmem:[%s2398_s13 + $0x68] sm:$0xff]   ;;  %p2218_p11 = scmp.ne.s32.totalorder %s2917_s17, %s2217_s25 }
  0x1e   : > { %v2176_v46 = vld [vmem:[%s2398_s13 + $0x38] sm:$0xff]   ;;  %v2179_v49 = vld [vmem:[%s2398_s13 + $0x50] sm:$0xff]   ;;  %v306_v59 = vld [vmem:[%s2966_s2] sm:$0xf] }
  0x1f   : > { %1900 = vmatpush3.bf16.msra.mxu0 %v2188_v15  ;;  %2012 = vmatpush3.bf16.msra.mxu1 %v2190_v17  ;;  %v2180_v50 = vld [vmem:[%s2398_s13 + $0x58] sm:$0xff]   ;;  %v2191_v53 = vld [vmem:[%s2398_s13 + $0x70] sm:$0xff]   ;;  %v2569_v62 = vrot.slane %v306_v59, %v310_v57  ;;  %v2571_v63 = vrot.slane %v306_v59, %v318_v58  ;;  %v2573_v0 = vrot.slane %v306_v59, %v314_v60  ;;  %p2219_p12 = pnand %p2218_p11, %p2358_p5 }
  0x20   : > { %1901 = vmatprep.subr.bf16.mxu0 %v2193_v19  ;;  %2013 = vmatprep.subr.bf16.mxu1 %v2195_v21  ;;  %v2192_v54 = vld [vmem:[%s2398_s13 + $0x78] sm:$0xff]   ;;  %v2575_v1 = vrot.slane %v306_v59, %v322_v61  ;;  %s2221_s13 = sshll.u32 %s2282_s28, 4  ;;  %s2222_s13 = int_to_ptr.vmem [resolvable:$false] %s2221_s13 }
  0x21   : > { %1825 = vmatmul.mubr.msk.bf16.gmra.mrb[4].mxu0 %vm424_vm1, %v2170_v12  ;;  %1842 = vmatmul.mubr.msk.bf16.gmra.mrb[4].mxu1 %vm424_vm1, %v2170_v12  ;;  %p2220_p13 = pneg %p2219_p12  ;;  %s2223_s29 = scalar_lea.vmem %s2222_s13, 8192 }
  0x22   : > { %538 = vmatprep.mubr.bf16.mxu0 %v2281_v3  ;;  %731 = vmatprep.mubr.bf16.mxu1 %v2281_v3  ;;  %p2224_p0 = scmp.lt.s32.totalorder %s2917_s17, %s2222_s13  ;;  %p2225_p1 = scmp.lt.s32.totalorder %s2223_s29, %s2217_s25 }
  0x23   : > { %1902 = vmatpush3.bf16.msra.mxu0 %v2194_v20  ;;  %2014 = vmatpush3.bf16.msra.mxu1 %v2196_v22 }
  0x24   : > { %1903 = vmatprep.subr.bf16.mxu0 %v2197_v23  ;;  %2015 = vmatprep.subr.bf16.mxu1 %v2199_v25  ;;  %p2226_p2 = por %p2225_p1, %p2224_p0 }
  0x26   : > { %p2227_p3 = pnand %p2226_p2, %p2220_p13 }
  0x27   : > { %1904 = vmatpush3.bf16.msra.mxu0 %v2198_v24  ;;  %2016 = vmatpush3.bf16.msra.mxu1 %v2200_v26 }
  0x28   : > { %1905 = vmatprep.subr.bf16.mxu0 %v2201_v28  ;;  %2017 = vmatprep.subr.bf16.mxu1 %v2203_v30 }
  0x29   : > { %1826 = vmatmul.mubr.msk.bf16.gmra.mrb[8].mxu0 %vm424_vm1, %v2171_v13  ;;  %1843 = vmatmul.mubr.msk.bf16.gmra.mrb[8].mxu1 %vm424_vm1, %v2171_v13 }
  0x2a   : > { %548 = vmatprep.mubr.bf16.mxu0 %v2281_v3  ;;  %741 = vmatprep.mubr.bf16.mxu1 %v2281_v3 }
  0x2b   : > { %1906 = vmatpush3.bf16.msra.mxu0 %v2202_v29  ;;  %2018 = vmatpush3.bf16.msra.mxu1 %v2204_v31 }
  0x2c   : > { %1907 = vmatprep.subr.bf16.mxu0 %v2205_v32  ;;  %2019 = vmatprep.subr.bf16.mxu1 %v2207_v34 }
  0x2f   : > { %1908 = vmatpush3.bf16.msra.mxu0 %v2206_v33  ;;  %2020 = vmatpush3.bf16.msra.mxu1 %v2208_v35 }
  0x30   : > { %1909 = vmatprep.subr.bf16.mxu0 %v2209_v37  ;;  %2021 = vmatprep.subr.bf16.mxu1 %v2211_v39 }
  0x31   : > { %1827 = vmatmul.mubr.msk.bf16.gmra.mrb[12].mxu0 %vm424_vm1, %v2172_v18  ;;  %1844 = vmatmul.mubr.msk.bf16.gmra.mrb[12].mxu1 %vm424_vm1, %v2172_v18 }
  0x32   : > { %558 = vmatprep.mubr.bf16.mxu0 %v2281_v3  ;;  %751 = vmatprep.mubr.bf16.mxu1 %v2281_v3 }
  0x33   : > { %1910 = vmatpush3.bf16.msra.mxu0 %v2210_v38  ;;  %2022 = vmatpush3.bf16.msra.mxu1 %v2212_v40 }
  0x34   : > { %1911 = vmatprep.subr.bf16.mxu0 %v2213_v41  ;;  %2023 = vmatprep.subr.bf16.mxu1 %v2215_v43 }
  0x37   : > { %1912 = vmatpush3.bf16.msra.mxu0 %v2214_v42  ;;  %2024 = vmatpush3.bf16.msra.mxu1 %v2216_v44 }
  0x39   : > { %1828 = vmatmul.mubr.msk.bf16.gmra.mrb[16].mxu0 %vm424_vm1, %v2173_v27  ;;  %1845 = vmatmul.mubr.msk.bf16.gmra.mrb[16].mxu1 %vm424_vm1, %v2173_v27 }
  0x3a   : > { %568 = vmatprep.mubr.bf16.mxu0 %v2281_v3  ;;  %761 = vmatprep.mubr.bf16.mxu1 %v2281_v3 }
  0x41   : > { %1829 = vmatmul.mubr.msk.bf16.gmra.mrb[20].mxu0 %vm424_vm1, %v2174_v36  ;;  %1846 = vmatmul.mubr.msk.bf16.gmra.mrb[20].mxu1 %vm424_vm1, %v2174_v36 }
  0x42   : > { %578 = vmatprep.mubr.bf16.mxu0 %v2281_v3  ;;  %771 = vmatprep.mubr.bf16.mxu1 %v2281_v3 }
  0x49   : > { %1830 = vmatmul.mubr.msk.bf16.gmra.mrb[24].mxu0 %vm424_vm1, %v2175_v45  ;;  %1847 = vmatmul.mubr.msk.bf16.gmra.mrb[24].mxu1 %vm424_vm1, %v2175_v45 }
  0x4a   : > { %588 = vmatprep.mubr.bf16.mxu0 %v2281_v3  ;;  %781 = vmatprep.mubr.bf16.mxu1 %v2281_v3 }
  0x51   : > { %1831 = vmatmul.mubr.msk.bf16.gmra.mrb[28].mxu0 %vm424_vm1, %v2176_v46  ;;  %1848 = vmatmul.mubr.msk.bf16.gmra.mrb[28].mxu1 %vm424_vm1, %v2176_v46 }
  0x52   : > { %598 = vmatprep.mubr.bf16.mxu0 %v2281_v3  ;;  %791 = vmatprep.mubr.bf16.mxu1 %v2281_v3 }
  0x59   : > { %1832 = vmatmul.mubr.msk.bf16.gmra.mrb[32].mxu0 %vm424_vm1, %v2177_v47  ;;  %1849 = vmatmul.mubr.msk.bf16.gmra.mrb[32].mxu1 %vm424_vm1, %v2177_v47 }
  0x5a   : > { %608 = vmatprep.mubr.bf16.mxu0 %v2281_v3  ;;  %801 = vmatprep.mubr.bf16.mxu1 %v2281_v3 }
  0x61   : > { %1833 = vmatmul.mubr.msk.bf16.gmra.mrb[36].mxu0 %vm424_vm1, %v2178_v48  ;;  %1850 = vmatmul.mubr.msk.bf16.gmra.mrb[36].mxu1 %vm424_vm1, %v2178_v48 }
  0x62   : > { %618 = vmatprep.mubr.bf16.mxu0 %v2281_v3  ;;  %811 = vmatprep.mubr.bf16.mxu1 %v2281_v3 }
  0x69   : > { %1834 = vmatmul.mubr.msk.bf16.gmra.mrb[40].mxu0 %vm424_vm1, %v2179_v49  ;;  %1851 = vmatmul.mubr.msk.bf16.gmra.mrb[40].mxu1 %vm424_vm1, %v2179_v49 }
  0x6a   : > { %628 = vmatprep.mubr.bf16.mxu0 %v2281_v3  ;;  %821 = vmatprep.mubr.bf16.mxu1 %v2281_v3 }
  0x71   : > { %1835 = vmatmul.mubr.msk.bf16.gmra.mrb[44].mxu0 %vm424_vm1, %v2180_v50  ;;  %1852 = vmatmul.mubr.msk.bf16.gmra.mrb[44].mxu1 %vm424_vm1, %v2180_v50 }
  0x72   : > { %638 = vmatprep.mubr.bf16.mxu0 %v2281_v3  ;;  %831 = vmatprep.mubr.bf16.mxu1 %v2281_v3 }
  0x79   : > { %1836 = vmatmul.mubr.msk.bf16.gmra.mrb[48].mxu0 %vm424_vm1, %v2185_v51  ;;  %1853 = vmatmul.mubr.msk.bf16.gmra.mrb[48].mxu1 %vm424_vm1, %v2185_v51 }
  0x7a   : > { %648 = vmatprep.mubr.bf16.mxu0 %v2281_v3  ;;  %841 = vmatprep.mubr.bf16.mxu1 %v2281_v3 }
  0x81   : > { %1837 = vmatmul.mubr.msk.bf16.gmra.mrb[52].mxu0 %vm424_vm1, %v2186_v52  ;;  %1854 = vmatmul.mubr.msk.bf16.gmra.mrb[52].mxu1 %vm424_vm1, %v2186_v52 }
  0x82   : > { %658 = vmatprep.mubr.bf16.mxu0 %v2281_v3  ;;  %851 = vmatprep.mubr.bf16.mxu1 %v2281_v3 }
  0x89   : > { %1838 = vmatmul.mubr.msk.bf16.gmra.mrb[56].mxu0 %vm424_vm1, %v2191_v53  ;;  %1855 = vmatmul.mubr.msk.bf16.gmra.mrb[56].mxu1 %vm424_vm1, %v2191_v53 }
  0x8a   : > { %668 = vmatprep.mubr.bf16.mxu0 %v2281_v3  ;;  %861 = vmatprep.mubr.bf16.mxu1 %v2281_v3 }
  0x91   : > { %1839 = vmatmul.mubr.msk.bf16.gmra.mrb[60].mxu0 %vm424_vm1, %v2192_v54  ;;  %1856 = vmatmul.mubr.msk.bf16.gmra.mrb[60].mxu1 %vm424_vm1, %v2192_v54 }
  0xec   : > { %v520_v2 = vpop.f32.mrb[0].mxu0  ;;  %v713_v3 = vpop.f32.mrb[0].mxu1 }
  0xed   : > { %v521_v4 = vadd.f32 %v520_v2, %v2569_v62  ;;  %v714_v5 = vadd.f32 %v713_v3, %v2571_v63  ;;  %v522_v6 = vpop.f32.mrb[1].mxu0  ;;  %v715_v7 = vpop.f32.mrb[1].mxu1 }
  0xee   : > { %v523_v8 = vadd.f32 %v522_v6, %v2573_v0  ;;  %v716_v9 = vadd.f32 %v715_v7, %v2575_v1  ;;  %v524_v10 = vpop.f32.mrb[2].mxu0  ;;  %v717_v11 = vpop.f32.mrb[2].mxu1 }
  0xef   : > { %1521 = vst [vmem:[%s2580_s9] sm:$0xff] %v521_v4  ;;  %1523 = vst [vmem:[%s2580_s9 + $0x10] sm:$0xff] %v714_v5  ;;  %v525_v12 = vadd.f32 %v524_v10, %v2569_v62  ;;  %v718_v13 = vadd.f32 %v717_v11, %v2571_v63  ;;  %v526_v14 = vpop.f32.mrb[3].mxu0  ;;  %v719_v15 = vpop.f32.mrb[3].mxu1 }
  0xf0   : > { %1522 = vst [vmem:[%s2580_s9 + $0x8] sm:$0xff] %v523_v8  ;;  %1524 = vst [vmem:[%s2580_s9 + $0x18] sm:$0xff] %v716_v9  ;;  %v527_v16 = vadd.f32 %v526_v14, %v2573_v0  ;;  %v720_v17 = vadd.f32 %v719_v15, %v2575_v1 }
  0xf1   : > { %v872_v18 = vpack.c.bf16 %v525_v12, %v521_v4  ;;  %1525 = vst [vmem:[%s2580_s9 + $0x20] sm:$0xff] %v525_v12  ;;  %v874_v19 = vpack.c.bf16 %v718_v13, %v714_v5  ;;  %1527 = vst [vmem:[%s2580_s9 + $0x30] sm:$0xff] %v718_v13 }
  0xf2   : > { %v873_v20 = vpack.c.bf16 %v527_v16, %v523_v8  ;;  %1526 = vst [vmem:[%s2580_s9 + $0x28] sm:$0xff] %v527_v16  ;;  %v875_v21 = vpack.c.bf16 %v720_v17, %v716_v9  ;;  %1528 = vst [vmem:[%s2580_s9 + $0x38] sm:$0xff] %v720_v17 }
  0xf4   : > { %v530_v22 = vpop.f32.mrb[4].mxu0  ;;  %v723_v23 = vpop.f32.mrb[4].mxu1  ;;  %1231 = vmatprep.mubr.bf16.mxu0 %v873_v20  ;;  %1392 = vmatprep.mubr.bf16.mxu1 %v875_v21 }
  0xf5   : > { %v531_v24 = vadd.f32 %v530_v22, %v2569_v62  ;;  %v724_v25 = vadd.f32 %v723_v23, %v2571_v63  ;;  %v532_v26 = vpop.f32.mrb[5].mxu0  ;;  %v725_v27 = vpop.f32.mrb[5].mxu1  ;;  %1232 = vmatmul.mubr.bf16.vlgmr.msra.gmra.mrb[64].mxu0 %v872_v18  ;;  %1393 = vmatmul.mubr.bf16.vlgmr.msra.gmra.mrb[64].mxu1 %v874_v19 }
  0xf6   : > { %v533_v28 = vadd.f32 %v532_v26, %v2573_v0  ;;  %v726_v29 = vadd.f32 %v725_v27, %v2575_v1  ;;  %v534_v30 = vpop.f32.mrb[6].mxu0  ;;  %v727_v31 = vpop.f32.mrb[6].mxu1 }
  0xf7   : > { %1529 = vst [vmem:[%s2580_s9 + $0x40] sm:$0xff] %v531_v24  ;;  %1531 = vst [vmem:[%s2580_s9 + $0x50] sm:$0xff] %v724_v25  ;;  %v535_v32 = vadd.f32 %v534_v30, %v2569_v62  ;;  %v728_v33 = vadd.f32 %v727_v31, %v2571_v63  ;;  %v536_v34 = vpop.f32.mrb[7].mxu0  ;;  %v729_v35 = vpop.f32.mrb[7].mxu1 }
  0xf8   : > { %1530 = vst [vmem:[%s2580_s9 + $0x48] sm:$0xff] %v533_v28  ;;  %1532 = vst [vmem:[%s2580_s9 + $0x58] sm:$0xff] %v726_v29  ;;  %v537_v36 = vadd.f32 %v536_v34, %v2573_v0  ;;  %v730_v37 = vadd.f32 %v729_v35, %v2575_v1 }
  0xf9   : > { %v876_v38 = vpack.c.bf16 %v535_v32, %v531_v24  ;;  %1533 = vst [vmem:[%s2580_s9 + $0x60] sm:$0xff] %v535_v32  ;;  %v878_v39 = vpack.c.bf16 %v728_v33, %v724_v25  ;;  %1535 = vst [vmem:[%s2580_s9 + $0x70] sm:$0xff] %v728_v33 }
  0xfa   : > { %v877_v40 = vpack.c.bf16 %v537_v36, %v533_v28  ;;  %1534 = vst [vmem:[%s2580_s9 + $0x68] sm:$0xff] %v537_v36  ;;  %v879_v41 = vpack.c.bf16 %v730_v37, %v726_v29  ;;  %1536 = vst [vmem:[%s2580_s9 + $0x78] sm:$0xff] %v730_v37 }
  0xfc   : > { %v540_v42 = vpop.f32.mrb[8].mxu0  ;;  %v733_v43 = vpop.f32.mrb[8].mxu1  ;;  %1239 = vmatprep.mubr.bf16.mxu0 %v877_v40  ;;  %1400 = vmatprep.mubr.bf16.mxu1 %v879_v41 }
  0xfd   : > { %v541_v44 = vadd.f32 %v540_v42, %v2569_v62  ;;  %v734_v45 = vadd.f32 %v733_v43, %v2571_v63  ;;  %v542_v46 = vpop.f32.mrb[9].mxu0  ;;  %v735_v47 = vpop.f32.mrb[9].mxu1  ;;  %1240 = vmatmul.mubr.bf16.gmra.mrb[68].mxu0 %v876_v38  ;;  %1401 = vmatmul.mubr.bf16.gmra.mrb[68].mxu1 %v878_v39 }
  0xfe   : > { %v543_v48 = vadd.f32 %v542_v46, %v2573_v0  ;;  %v736_v49 = vadd.f32 %v735_v47, %v2575_v1  ;;  %v544_v50 = vpop.f32.mrb[10].mxu0  ;;  %v737_v51 = vpop.f32.mrb[10].mxu1 }
  0xff   : > { %1537 = vst [vmem:[%s2580_s9 + $0x80] sm:$0xff] %v541_v44  ;;  %1539 = vst [vmem:[%s2580_s9 + $0x90] sm:$0xff] %v734_v45  ;;  %v545_v52 = vadd.f32 %v544_v50, %v2569_v62  ;;  %v738_v53 = vadd.f32 %v737_v51, %v2571_v63  ;;  %v546_v54 = vpop.f32.mrb[11].mxu0  ;;  %v739_v55 = vpop.f32.mrb[11].mxu1 }
 0x100   : > { %1538 = vst [vmem:[%s2580_s9 + $0x88] sm:$0xff] %v543_v48  ;;  %1540 = vst [vmem:[%s2580_s9 + $0x98] sm:$0xff] %v736_v49  ;;  %v547_v56 = vadd.f32 %v546_v54, %v2573_v0  ;;  %v740_v57 = vadd.f32 %v739_v55, %v2575_v1 }
 0x101   : > { %v880_v58 = vpack.c.bf16 %v545_v52, %v541_v44  ;;  %1541 = vst [vmem:[%s2580_s9 + $0xa0] sm:$0xff] %v545_v52  ;;  %v882_v59 = vpack.c.bf16 %v738_v53, %v734_v45  ;;  %1543 = vst [vmem:[%s2580_s9 + $0xb0] sm:$0xff] %v738_v53 }
 0x102   : > { %v881_v60 = vpack.c.bf16 %v547_v56, %v543_v48  ;;  %1542 = vst [vmem:[%s2580_s9 + $0xa8] sm:$0xff] %v547_v56  ;;  %v883_v61 = vpack.c.bf16 %v740_v57, %v736_v49  ;;  %1544 = vst [vmem:[%s2580_s9 + $0xb8] sm:$0xff] %v740_v57 }
 0x104   : > { %v550_v2 = vpop.f32.mrb[12].mxu0  ;;  %v743_v3 = vpop.f32.mrb[12].mxu1  ;;  %1247 = vmatprep.mubr.bf16.mxu0 %v881_v60  ;;  %1408 = vmatprep.mubr.bf16.mxu1 %v883_v61 }
 0x105   : > { %v551_v4 = vadd.f32 %v550_v2, %v2569_v62  ;;  %v744_v5 = vadd.f32 %v743_v3, %v2571_v63  ;;  %v552_v6 = vpop.f32.mrb[13].mxu0  ;;  %v745_v7 = vpop.f32.mrb[13].mxu1  ;;  %1248 = vmatmul.mubr.bf16.gmra.mrb[72].mxu0 %v880_v58  ;;  %1409 = vmatmul.mubr.bf16.gmra.mrb[72].mxu1 %v882_v59 }
 0x106   : > { %v553_v8 = vadd.f32 %v552_v6, %v2573_v0  ;;  %v746_v9 = vadd.f32 %v745_v7, %v2575_v1  ;;  %v554_v10 = vpop.f32.mrb[14].mxu0  ;;  %v747_v11 = vpop.f32.mrb[14].mxu1 }
 0x107   : > { %1545 = vst [vmem:[%s2580_s9 + $0xc0] sm:$0xff] %v551_v4  ;;  %1547 = vst [vmem:[%s2580_s9 + $0xd0] sm:$0xff] %v744_v5  ;;  %v555_v12 = vadd.f32 %v554_v10, %v2569_v62  ;;  %v748_v13 = vadd.f32 %v747_v11, %v2571_v63  ;;  %v556_v14 = vpop.f32.mrb[15].mxu0  ;;  %v749_v15 = vpop.f32.mrb[15].mxu1 }
 0x108   : > { %1546 = vst [vmem:[%s2580_s9 + $0xc8] sm:$0xff] %v553_v8  ;;  %1548 = vst [vmem:[%s2580_s9 + $0xd8] sm:$0xff] %v746_v9  ;;  %v557_v16 = vadd.f32 %v556_v14, %v2573_v0  ;;  %v750_v17 = vadd.f32 %v749_v15, %v2575_v1 }
 0x109   : > { %v884_v18 = vpack.c.bf16 %v555_v12, %v551_v4  ;;  %1549 = vst [vmem:[%s2580_s9 + $0xe0] sm:$0xff] %v555_v12  ;;  %v886_v19 = vpack.c.bf16 %v748_v13, %v744_v5  ;;  %1551 = vst [vmem:[%s2580_s9 + $0xf0] sm:$0xff] %v748_v13 }
 0x10a   : > { %v885_v20 = vpack.c.bf16 %v557_v16, %v553_v8  ;;  %1550 = vst [vmem:[%s2580_s9 + $0xe8] sm:$0xff] %v557_v16  ;;  %v887_v21 = vpack.c.bf16 %v750_v17, %v746_v9  ;;  %1552 = vst [vmem:[%s2580_s9 + $0xf8] sm:$0xff] %v750_v17 }
 0x10c   : > { %v560_v22 = vpop.f32.mrb[16].mxu0  ;;  %v753_v23 = vpop.f32.mrb[16].mxu1  ;;  %1255 = vmatprep.mubr.bf16.mxu0 %v885_v20  ;;  %1416 = vmatprep.mubr.bf16.mxu1 %v887_v21 }
 0x10d   : > { %v561_v24 = vadd.f32 %v560_v22, %v2569_v62  ;;  %v754_v25 = vadd.f32 %v753_v23, %v2571_v63  ;;  %v562_v26 = vpop.f32.mrb[17].mxu0  ;;  %v755_v27 = vpop.f32.mrb[17].mxu1  ;;  %1256 = vmatmul.mubr.bf16.gmra.mrb[76].mxu0 %v884_v18  ;;  %1417 = vmatmul.mubr.bf16.gmra.mrb[76].mxu1 %v886_v19 }
 0x10e   : > { %v563_v28 = vadd.f32 %v562_v26, %v2573_v0  ;;  %v756_v29 = vadd.f32 %v755_v27, %v2575_v1  ;;  %v564_v30 = vpop.f32.mrb[18].mxu0  ;;  %v757_v31 = vpop.f32.mrb[18].mxu1 }
 0x10f   : > { %1553 = vst [vmem:[%s2580_s9 + $0x100] sm:$0xff] %v561_v24  ;;  %1555 = vst [vmem:[%s2580_s9 + $0x110] sm:$0xff] %v754_v25  ;;  %v565_v32 = vadd.f32 %v564_v30, %v2569_v62  ;;  %v758_v33 = vadd.f32 %v757_v31, %v2571_v63  ;;  %v566_v34 = vpop.f32.mrb[19].mxu0  ;;  %v759_v35 = vpop.f32.mrb[19].mxu1 }
 0x110   : > { %1554 = vst [vmem:[%s2580_s9 + $0x108] sm:$0xff] %v563_v28  ;;  %1556 = vst [vmem:[%s2580_s9 + $0x118] sm:$0xff] %v756_v29  ;;  %v567_v36 = vadd.f32 %v566_v34, %v2573_v0  ;;  %v760_v37 = vadd.f32 %v759_v35, %v2575_v1 }
 0x111   : > { %v888_v38 = vpack.c.bf16 %v565_v32, %v561_v24  ;;  %1557 = vst [vmem:[%s2580_s9 + $0x120] sm:$0xff] %v565_v32  ;;  %v890_v39 = vpack.c.bf16 %v758_v33, %v754_v25  ;;  %1559 = vst [vmem:[%s2580_s9 + $0x130] sm:$0xff] %v758_v33 }
 0x112   : > { %v889_v40 = vpack.c.bf16 %v567_v36, %v563_v28  ;;  %1558 = vst [vmem:[%s2580_s9 + $0x128] sm:$0xff] %v567_v36  ;;  %v891_v41 = vpack.c.bf16 %v760_v37, %v756_v29  ;;  %1560 = vst [vmem:[%s2580_s9 + $0x138] sm:$0xff] %v760_v37 }
 0x114   : > { %v570_v42 = vpop.f32.mrb[20].mxu0  ;;  %v763_v43 = vpop.f32.mrb[20].mxu1  ;;  %1263 = vmatprep.mubr.bf16.mxu0 %v889_v40  ;;  %1424 = vmatprep.mubr.bf16.mxu1 %v891_v41 }
 0x115   : > { %v571_v44 = vadd.f32 %v570_v42, %v2569_v62  ;;  %v764_v45 = vadd.f32 %v763_v43, %v2571_v63  ;;  %v572_v46 = vpop.f32.mrb[21].mxu0  ;;  %v765_v47 = vpop.f32.mrb[21].mxu1  ;;  %1264 = vmatmul.mubr.bf16.gmra.mrb[80].mxu0 %v888_v38  ;;  %1425 = vmatmul.mubr.bf16.gmra.mrb[80].mxu1 %v890_v39 }
 0x116   : > { %v573_v48 = vadd.f32 %v572_v46, %v2573_v0  ;;  %v766_v49 = vadd.f32 %v765_v47, %v2575_v1  ;;  %v574_v50 = vpop.f32.mrb[22].mxu0  ;;  %v767_v51 = vpop.f32.mrb[22].mxu1 }
 0x117   : > { %1561 = vst [vmem:[%s2580_s9 + $0x140] sm:$0xff] %v571_v44  ;;  %1563 = vst [vmem:[%s2580_s9 + $0x150] sm:$0xff] %v764_v45  ;;  %v575_v52 = vadd.f32 %v574_v50, %v2569_v62  ;;  %v768_v53 = vadd.f32 %v767_v51, %v2571_v63  ;;  %v576_v54 = vpop.f32.mrb[23].mxu0  ;;  %v769_v55 = vpop.f32.mrb[23].mxu1 }
 0x118   : > { %1562 = vst [vmem:[%s2580_s9 + $0x148] sm:$0xff] %v573_v48  ;;  %1564 = vst [vmem:[%s2580_s9 + $0x158] sm:$0xff] %v766_v49  ;;  %v577_v56 = vadd.f32 %v576_v54, %v2573_v0  ;;  %v770_v57 = vadd.f32 %v769_v55, %v2575_v1 }
 0x119   : > { %v892_v58 = vpack.c.bf16 %v575_v52, %v571_v44  ;;  %1565 = vst [vmem:[%s2580_s9 + $0x160] sm:$0xff] %v575_v52  ;;  %v894_v59 = vpack.c.bf16 %v768_v53, %v764_v45  ;;  %1567 = vst [vmem:[%s2580_s9 + $0x170] sm:$0xff] %v768_v53 }
 0x11a   : > { %v893_v60 = vpack.c.bf16 %v577_v56, %v573_v48  ;;  %1566 = vst [vmem:[%s2580_s9 + $0x168] sm:$0xff] %v577_v56  ;;  %v895_v61 = vpack.c.bf16 %v770_v57, %v766_v49  ;;  %1568 = vst [vmem:[%s2580_s9 + $0x178] sm:$0xff] %v770_v57 }
 0x11c   : > { %v580_v2 = vpop.f32.mrb[24].mxu0  ;;  %v773_v3 = vpop.f32.mrb[24].mxu1  ;;  %1271 = vmatprep.mubr.bf16.mxu0 %v893_v60  ;;  %1432 = vmatprep.mubr.bf16.mxu1 %v895_v61 }
 0x11d   : > { %v581_v4 = vadd.f32 %v580_v2, %v2569_v62  ;;  %v774_v5 = vadd.f32 %v773_v3, %v2571_v63  ;;  %v582_v6 = vpop.f32.mrb[25].mxu0  ;;  %v775_v7 = vpop.f32.mrb[25].mxu1  ;;  %1272 = vmatmul.mubr.bf16.gmra.mrb[84].mxu0 %v892_v58  ;;  %1433 = vmatmul.mubr.bf16.gmra.mrb[84].mxu1 %v894_v59 }
 0x11e   : > { %v583_v8 = vadd.f32 %v582_v6, %v2573_v0  ;;  %v776_v9 = vadd.f32 %v775_v7, %v2575_v1  ;;  %v584_v10 = vpop.f32.mrb[26].mxu0  ;;  %v777_v11 = vpop.f32.mrb[26].mxu1 }
 0x11f   : > { %1569 = vst [vmem:[%s2580_s9 + $0x180] sm:$0xff] %v581_v4  ;;  %1571 = vst [vmem:[%s2580_s9 + $0x190] sm:$0xff] %v774_v5  ;;  %v585_v12 = vadd.f32 %v584_v10, %v2569_v62  ;;  %v778_v13 = vadd.f32 %v777_v11, %v2571_v63  ;;  %v586_v14 = vpop.f32.mrb[27].mxu0  ;;  %v779_v15 = vpop.f32.mrb[27].mxu1 }
 0x120   : > { %1570 = vst [vmem:[%s2580_s9 + $0x188] sm:$0xff] %v583_v8  ;;  %1572 = vst [vmem:[%s2580_s9 + $0x198] sm:$0xff] %v776_v9  ;;  %v587_v16 = vadd.f32 %v586_v14, %v2573_v0  ;;  %v780_v17 = vadd.f32 %v779_v15, %v2575_v1 }
 0x121   : > { %v896_v18 = vpack.c.bf16 %v585_v12, %v581_v4  ;;  %1573 = vst [vmem:[%s2580_s9 + $0x1a0] sm:$0xff] %v585_v12  ;;  %v898_v19 = vpack.c.bf16 %v778_v13, %v774_v5  ;;  %1575 = vst [vmem:[%s2580_s9 + $0x1b0] sm:$0xff] %v778_v13 }
 0x122   : > { %v897_v20 = vpack.c.bf16 %v587_v16, %v583_v8  ;;  %1574 = vst [vmem:[%s2580_s9 + $0x1a8] sm:$0xff] %v587_v16  ;;  %v899_v21 = vpack.c.bf16 %v780_v17, %v776_v9  ;;  %1576 = vst [vmem:[%s2580_s9 + $0x1b8] sm:$0xff] %v780_v17 }
 0x124   : > { %v590_v22 = vpop.f32.mrb[28].mxu0  ;;  %v783_v23 = vpop.f32.mrb[28].mxu1  ;;  %1279 = vmatprep.mubr.bf16.mxu0 %v897_v20  ;;  %1440 = vmatprep.mubr.bf16.mxu1 %v899_v21 }
 0x125   : > { %v591_v24 = vadd.f32 %v590_v22, %v2569_v62  ;;  %v784_v25 = vadd.f32 %v783_v23, %v2571_v63  ;;  %v592_v26 = vpop.f32.mrb[29].mxu0  ;;  %v785_v27 = vpop.f32.mrb[29].mxu1  ;;  %1280 = vmatmul.mubr.bf16.gmra.mrb[88].mxu0 %v896_v18  ;;  %1441 = vmatmul.mubr.bf16.gmra.mrb[88].mxu1 %v898_v19 }
 0x126   : > { %v593_v28 = vadd.f32 %v592_v26, %v2573_v0  ;;  %v786_v29 = vadd.f32 %v785_v27, %v2575_v1  ;;  %v594_v30 = vpop.f32.mrb[30].mxu0  ;;  %v787_v31 = vpop.f32.mrb[30].mxu1 }
 0x127   : > { %1577 = vst [vmem:[%s2580_s9 + $0x1c0] sm:$0xff] %v591_v24  ;;  %1579 = vst [vmem:[%s2580_s9 + $0x1d0] sm:$0xff] %v784_v25  ;;  %v595_v32 = vadd.f32 %v594_v30, %v2569_v62  ;;  %v788_v33 = vadd.f32 %v787_v31, %v2571_v63  ;;  %v596_v34 = vpop.f32.mrb[31].mxu0  ;;  %v789_v35 = vpop.f32.mrb[31].mxu1 }
 0x128   : > { %1578 = vst [vmem:[%s2580_s9 + $0x1c8] sm:$0xff] %v593_v28  ;;  %1580 = vst [vmem:[%s2580_s9 + $0x1d8] sm:$0xff] %v786_v29  ;;  %v597_v36 = vadd.f32 %v596_v34, %v2573_v0  ;;  %v790_v37 = vadd.f32 %v789_v35, %v2575_v1 }
 0x129   : > { %v900_v38 = vpack.c.bf16 %v595_v32, %v591_v24  ;;  %1581 = vst [vmem:[%s2580_s9 + $0x1e0] sm:$0xff] %v595_v32  ;;  %v902_v39 = vpack.c.bf16 %v788_v33, %v784_v25  ;;  %1583 = vst [vmem:[%s2580_s9 + $0x1f0] sm:$0xff] %v788_v33 }
 0x12a   : > { %v901_v40 = vpack.c.bf16 %v597_v36, %v593_v28  ;;  %1582 = vst [vmem:[%s2580_s9 + $0x1e8] sm:$0xff] %v597_v36  ;;  %v903_v41 = vpack.c.bf16 %v790_v37, %v786_v29  ;;  %1584 = vst [vmem:[%s2580_s9 + $0x1f8] sm:$0xff] %v790_v37 }
 0x12c   : > { %v600_v42 = vpop.f32.mrb[32].mxu0  ;;  %v793_v43 = vpop.f32.mrb[32].mxu1  ;;  %1287 = vmatprep.mubr.bf16.mxu0 %v901_v40  ;;  %1448 = vmatprep.mubr.bf16.mxu1 %v903_v41 }
 0x12d   : > { %v601_v44 = vadd.f32 %v600_v42, %v2569_v62  ;;  %v794_v45 = vadd.f32 %v793_v43, %v2571_v63  ;;  %v602_v46 = vpop.f32.mrb[33].mxu0  ;;  %v795_v47 = vpop.f32.mrb[33].mxu1  ;;  %1288 = vmatmul.mubr.bf16.gmra.mrb[92].mxu0 %v900_v38  ;;  %1449 = vmatmul.mubr.bf16.gmra.mrb[92].mxu1 %v902_v39 }
 0x12e   : > { %v603_v48 = vadd.f32 %v602_v46, %v2573_v0  ;;  %v796_v49 = vadd.f32 %v795_v47, %v2575_v1  ;;  %v604_v50 = vpop.f32.mrb[34].mxu0  ;;  %v797_v51 = vpop.f32.mrb[34].mxu1 }
 0x12f   : > { %1585 = vst [vmem:[%s2580_s9 + $0x200] sm:$0xff] %v601_v44  ;;  %1587 = vst [vmem:[%s2580_s9 + $0x210] sm:$0xff] %v794_v45  ;;  %v605_v52 = vadd.f32 %v604_v50, %v2569_v62  ;;  %v798_v53 = vadd.f32 %v797_v51, %v2571_v63  ;;  %v606_v54 = vpop.f32.mrb[35].mxu0  ;;  %v799_v55 = vpop.f32.mrb[35].mxu1 }
 0x130   : > { %1586 = vst [vmem:[%s2580_s9 + $0x208] sm:$0xff] %v603_v48  ;;  %1588 = vst [vmem:[%s2580_s9 + $0x218] sm:$0xff] %v796_v49  ;;  %v607_v56 = vadd.f32 %v606_v54, %v2573_v0  ;;  %v800_v57 = vadd.f32 %v799_v55, %v2575_v1 }
 0x131   : > { %v904_v58 = vpack.c.bf16 %v605_v52, %v601_v44  ;;  %1589 = vst [vmem:[%s2580_s9 + $0x220] sm:$0xff] %v605_v52  ;;  %v906_v59 = vpack.c.bf16 %v798_v53, %v794_v45  ;;  %1591 = vst [vmem:[%s2580_s9 + $0x230] sm:$0xff] %v798_v53 }
 0x132   : > { %v905_v60 = vpack.c.bf16 %v607_v56, %v603_v48  ;;  %1590 = vst [vmem:[%s2580_s9 + $0x228] sm:$0xff] %v607_v56  ;;  %v907_v61 = vpack.c.bf16 %v800_v57, %v796_v49  ;;  %1592 = vst [vmem:[%s2580_s9 + $0x238] sm:$0xff] %v800_v57 }
 0x134   : > { %v610_v2 = vpop.f32.mrb[36].mxu0  ;;  %v803_v3 = vpop.f32.mrb[36].mxu1  ;;  %1295 = vmatprep.mubr.bf16.mxu0 %v905_v60  ;;  %1456 = vmatprep.mubr.bf16.mxu1 %v907_v61 }
 0x135   : > { %v611_v4 = vadd.f32 %v610_v2, %v2569_v62  ;;  %v804_v5 = vadd.f32 %v803_v3, %v2571_v63  ;;  %v612_v6 = vpop.f32.mrb[37].mxu0  ;;  %v805_v7 = vpop.f32.mrb[37].mxu1  ;;  %1296 = vmatmul.mubr.bf16.gmra.mrb[96].mxu0 %v904_v58  ;;  %1457 = vmatmul.mubr.bf16.gmra.mrb[96].mxu1 %v906_v59 }
 0x136   : > { %v613_v8 = vadd.f32 %v612_v6, %v2573_v0  ;;  %v806_v9 = vadd.f32 %v805_v7, %v2575_v1  ;;  %v614_v10 = vpop.f32.mrb[38].mxu0  ;;  %v807_v11 = vpop.f32.mrb[38].mxu1 }
 0x137   : > { %1593 = vst [vmem:[%s2580_s9 + $0x240] sm:$0xff] %v611_v4  ;;  %1595 = vst [vmem:[%s2580_s9 + $0x250] sm:$0xff] %v804_v5  ;;  %v615_v12 = vadd.f32 %v614_v10, %v2569_v62  ;;  %v808_v13 = vadd.f32 %v807_v11, %v2571_v63  ;;  %v616_v14 = vpop.f32.mrb[39].mxu0  ;;  %v809_v15 = vpop.f32.mrb[39].mxu1 }
 0x138   : > { %1594 = vst [vmem:[%s2580_s9 + $0x248] sm:$0xff] %v613_v8  ;;  %1596 = vst [vmem:[%s2580_s9 + $0x258] sm:$0xff] %v806_v9  ;;  %v617_v16 = vadd.f32 %v616_v14, %v2573_v0  ;;  %v810_v17 = vadd.f32 %v809_v15, %v2575_v1 }
 0x139   : > { %v908_v18 = vpack.c.bf16 %v615_v12, %v611_v4  ;;  %1597 = vst [vmem:[%s2580_s9 + $0x260] sm:$0xff] %v615_v12  ;;  %v910_v19 = vpack.c.bf16 %v808_v13, %v804_v5  ;;  %1599 = vst [vmem:[%s2580_s9 + $0x270] sm:$0xff] %v808_v13 }
 0x13a   : > { %v909_v20 = vpack.c.bf16 %v617_v16, %v613_v8  ;;  %1598 = vst [vmem:[%s2580_s9 + $0x268] sm:$0xff] %v617_v16  ;;  %v911_v21 = vpack.c.bf16 %v810_v17, %v806_v9  ;;  %1600 = vst [vmem:[%s2580_s9 + $0x278] sm:$0xff] %v810_v17 }
 0x13c   : > { %v620_v22 = vpop.f32.mrb[40].mxu0  ;;  %v813_v23 = vpop.f32.mrb[40].mxu1  ;;  %1303 = vmatprep.mubr.bf16.mxu0 %v909_v20  ;;  %1464 = vmatprep.mubr.bf16.mxu1 %v911_v21 }
 0x13d   : > { %v621_v24 = vadd.f32 %v620_v22, %v2569_v62  ;;  %v814_v25 = vadd.f32 %v813_v23, %v2571_v63  ;;  %v622_v26 = vpop.f32.mrb[41].mxu0  ;;  %v815_v27 = vpop.f32.mrb[41].mxu1  ;;  %1304 = vmatmul.mubr.bf16.gmra.mrb[100].mxu0 %v908_v18  ;;  %1465 = vmatmul.mubr.bf16.gmra.mrb[100].mxu1 %v910_v19 }
 0x13e   : > { %v623_v28 = vadd.f32 %v622_v26, %v2573_v0  ;;  %v816_v29 = vadd.f32 %v815_v27, %v2575_v1  ;;  %v624_v30 = vpop.f32.mrb[42].mxu0  ;;  %v817_v31 = vpop.f32.mrb[42].mxu1 }
 0x13f   : > { %1601 = vst [vmem:[%s2580_s9 + $0x280] sm:$0xff] %v621_v24  ;;  %1603 = vst [vmem:[%s2580_s9 + $0x290] sm:$0xff] %v814_v25  ;;  %v625_v32 = vadd.f32 %v624_v30, %v2569_v62  ;;  %v818_v33 = vadd.f32 %v817_v31, %v2571_v63  ;;  %v626_v34 = vpop.f32.mrb[43].mxu0  ;;  %v819_v35 = vpop.f32.mrb[43].mxu1 }
 0x140   : > { %1602 = vst [vmem:[%s2580_s9 + $0x288] sm:$0xff] %v623_v28  ;;  %1604 = vst [vmem:[%s2580_s9 + $0x298] sm:$0xff] %v816_v29  ;;  %v627_v36 = vadd.f32 %v626_v34, %v2573_v0  ;;  %v820_v37 = vadd.f32 %v819_v35, %v2575_v1 }
 0x141   : > { %v912_v38 = vpack.c.bf16 %v625_v32, %v621_v24  ;;  %1605 = vst [vmem:[%s2580_s9 + $0x2a0] sm:$0xff] %v625_v32  ;;  %v914_v39 = vpack.c.bf16 %v818_v33, %v814_v25  ;;  %1607 = vst [vmem:[%s2580_s9 + $0x2b0] sm:$0xff] %v818_v33 }
 0x142   : > { %v913_v40 = vpack.c.bf16 %v627_v36, %v623_v28  ;;  %1606 = vst [vmem:[%s2580_s9 + $0x2a8] sm:$0xff] %v627_v36  ;;  %v915_v41 = vpack.c.bf16 %v820_v37, %v816_v29  ;;  %1608 = vst [vmem:[%s2580_s9 + $0x2b8] sm:$0xff] %v820_v37 }
 0x144   : > { %v630_v42 = vpop.f32.mrb[44].mxu0  ;;  %v823_v43 = vpop.f32.mrb[44].mxu1  ;;  %1311 = vmatprep.mubr.bf16.mxu0 %v913_v40  ;;  %1472 = vmatprep.mubr.bf16.mxu1 %v915_v41 }
 0x145   : > { %v631_v44 = vadd.f32 %v630_v42, %v2569_v62  ;;  %v824_v45 = vadd.f32 %v823_v43, %v2571_v63  ;;  %v632_v46 = vpop.f32.mrb[45].mxu0  ;;  %v825_v47 = vpop.f32.mrb[45].mxu1  ;;  %1312 = vmatmul.mubr.bf16.gmra.mrb[104].mxu0 %v912_v38  ;;  %1473 = vmatmul.mubr.bf16.gmra.mrb[104].mxu1 %v914_v39 }
 0x146   : > { %v633_v48 = vadd.f32 %v632_v46, %v2573_v0  ;;  %v826_v49 = vadd.f32 %v825_v47, %v2575_v1  ;;  %v634_v50 = vpop.f32.mrb[46].mxu0  ;;  %v827_v51 = vpop.f32.mrb[46].mxu1 }
 0x147   : > { %1609 = vst [vmem:[%s2580_s9 + $0x2c0] sm:$0xff] %v631_v44  ;;  %1611 = vst [vmem:[%s2580_s9 + $0x2d0] sm:$0xff] %v824_v45  ;;  %v635_v52 = vadd.f32 %v634_v50, %v2569_v62  ;;  %v828_v53 = vadd.f32 %v827_v51, %v2571_v63  ;;  %v636_v54 = vpop.f32.mrb[47].mxu0  ;;  %v829_v55 = vpop.f32.mrb[47].mxu1 }
 0x148   : > { %1610 = vst [vmem:[%s2580_s9 + $0x2c8] sm:$0xff] %v633_v48  ;;  %1612 = vst [vmem:[%s2580_s9 + $0x2d8] sm:$0xff] %v826_v49  ;;  %v637_v56 = vadd.f32 %v636_v54, %v2573_v0  ;;  %v830_v57 = vadd.f32 %v829_v55, %v2575_v1 }
 0x149   : > { %v916_v58 = vpack.c.bf16 %v635_v52, %v631_v44  ;;  %1613 = vst [vmem:[%s2580_s9 + $0x2e0] sm:$0xff] %v635_v52  ;;  %v918_v59 = vpack.c.bf16 %v828_v53, %v824_v45  ;;  %1615 = vst [vmem:[%s2580_s9 + $0x2f0] sm:$0xff] %v828_v53 }
 0x14a   : > { %v917_v60 = vpack.c.bf16 %v637_v56, %v633_v48  ;;  %1614 = vst [vmem:[%s2580_s9 + $0x2e8] sm:$0xff] %v637_v56  ;;  %v919_v61 = vpack.c.bf16 %v830_v57, %v826_v49  ;;  %1616 = vst [vmem:[%s2580_s9 + $0x2f8] sm:$0xff] %v830_v57 }
 0x14c   : > { %v640_v2 = vpop.f32.mrb[48].mxu0  ;;  %v833_v3 = vpop.f32.mrb[48].mxu1  ;;  %1319 = vmatprep.mubr.bf16.mxu0 %v917_v60  ;;  %1480 = vmatprep.mubr.bf16.mxu1 %v919_v61 }
 0x14d   : > { %v641_v4 = vadd.f32 %v640_v2, %v2569_v62  ;;  %v834_v5 = vadd.f32 %v833_v3, %v2571_v63  ;;  %v642_v6 = vpop.f32.mrb[49].mxu0  ;;  %v835_v7 = vpop.f32.mrb[49].mxu1  ;;  %1320 = vmatmul.mubr.bf16.gmra.mrb[108].mxu0 %v916_v58  ;;  %1481 = vmatmul.mubr.bf16.gmra.mrb[108].mxu1 %v918_v59 }
 0x14e   : > { %v643_v8 = vadd.f32 %v642_v6, %v2573_v0  ;;  %v836_v9 = vadd.f32 %v835_v7, %v2575_v1  ;;  %v644_v10 = vpop.f32.mrb[50].mxu0  ;;  %v837_v11 = vpop.f32.mrb[50].mxu1 }
 0x14f   : > { %1617 = vst [vmem:[%s2580_s9 + $0x300] sm:$0xff] %v641_v4  ;;  %1619 = vst [vmem:[%s2580_s9 + $0x310] sm:$0xff] %v834_v5  ;;  %v645_v12 = vadd.f32 %v644_v10, %v2569_v62  ;;  %v838_v13 = vadd.f32 %v837_v11, %v2571_v63  ;;  %v646_v14 = vpop.f32.mrb[51].mxu0  ;;  %v839_v15 = vpop.f32.mrb[51].mxu1 }
 0x150   : > { %1618 = vst [vmem:[%s2580_s9 + $0x308] sm:$0xff] %v643_v8  ;;  %1620 = vst [vmem:[%s2580_s9 + $0x318] sm:$0xff] %v836_v9  ;;  %v647_v16 = vadd.f32 %v646_v14, %v2573_v0  ;;  %v840_v17 = vadd.f32 %v839_v15, %v2575_v1 }
 0x151   : > { %v920_v18 = vpack.c.bf16 %v645_v12, %v641_v4  ;;  %1621 = vst [vmem:[%s2580_s9 + $0x320] sm:$0xff] %v645_v12  ;;  %v922_v19 = vpack.c.bf16 %v838_v13, %v834_v5  ;;  %1623 = vst [vmem:[%s2580_s9 + $0x330] sm:$0xff] %v838_v13 }
 0x152   : > { %v921_v20 = vpack.c.bf16 %v647_v16, %v643_v8  ;;  %1622 = vst [vmem:[%s2580_s9 + $0x328] sm:$0xff] %v647_v16  ;;  %v923_v21 = vpack.c.bf16 %v840_v17, %v836_v9  ;;  %1624 = vst [vmem:[%s2580_s9 + $0x338] sm:$0xff] %v840_v17 }
 0x154   : > { %v650_v22 = vpop.f32.mrb[52].mxu0  ;;  %v843_v23 = vpop.f32.mrb[52].mxu1  ;;  %1327 = vmatprep.mubr.bf16.mxu0 %v921_v20  ;;  %1488 = vmatprep.mubr.bf16.mxu1 %v923_v21 }
 0x155   : > { %v651_v24 = vadd.f32 %v650_v22, %v2569_v62  ;;  %v844_v25 = vadd.f32 %v843_v23, %v2571_v63  ;;  %v652_v26 = vpop.f32.mrb[53].mxu0  ;;  %v845_v27 = vpop.f32.mrb[53].mxu1  ;;  %1328 = vmatmul.mubr.bf16.gmra.mrb[112].mxu0 %v920_v18  ;;  %1489 = vmatmul.mubr.bf16.gmra.mrb[112].mxu1 %v922_v19 }
 0x156   : > { %v653_v28 = vadd.f32 %v652_v26, %v2573_v0  ;;  %v846_v29 = vadd.f32 %v845_v27, %v2575_v1  ;;  %v654_v30 = vpop.f32.mrb[54].mxu0  ;;  %v847_v31 = vpop.f32.mrb[54].mxu1 }
 0x157   : > { %1625 = vst [vmem:[%s2580_s9 + $0x340] sm:$0xff] %v651_v24  ;;  %1627 = vst [vmem:[%s2580_s9 + $0x350] sm:$0xff] %v844_v25  ;;  %v655_v32 = vadd.f32 %v654_v30, %v2569_v62  ;;  %v848_v33 = vadd.f32 %v847_v31, %v2571_v63  ;;  %v656_v34 = vpop.f32.mrb[55].mxu0  ;;  %v849_v35 = vpop.f32.mrb[55].mxu1 }
 0x158   : > { %1626 = vst [vmem:[%s2580_s9 + $0x348] sm:$0xff] %v653_v28  ;;  %1628 = vst [vmem:[%s2580_s9 + $0x358] sm:$0xff] %v846_v29  ;;  %v657_v36 = vadd.f32 %v656_v34, %v2573_v0  ;;  %v850_v37 = vadd.f32 %v849_v35, %v2575_v1 }
 0x159   : > { %v924_v38 = vpack.c.bf16 %v655_v32, %v651_v24  ;;  %1629 = vst [vmem:[%s2580_s9 + $0x360] sm:$0xff] %v655_v32  ;;  %v926_v39 = vpack.c.bf16 %v848_v33, %v844_v25  ;;  %1631 = vst [vmem:[%s2580_s9 + $0x370] sm:$0xff] %v848_v33 }
 0x15a   : > { %v925_v40 = vpack.c.bf16 %v657_v36, %v653_v28  ;;  %1630 = vst [vmem:[%s2580_s9 + $0x368] sm:$0xff] %v657_v36  ;;  %v927_v41 = vpack.c.bf16 %v850_v37, %v846_v29  ;;  %1632 = vst [vmem:[%s2580_s9 + $0x378] sm:$0xff] %v850_v37 }
 0x15c   : > { %v660_v42 = vpop.f32.mrb[56].mxu0  ;;  %v853_v43 = vpop.f32.mrb[56].mxu1  ;;  %1335 = vmatprep.mubr.bf16.mxu0 %v925_v40  ;;  %1496 = vmatprep.mubr.bf16.mxu1 %v927_v41 }
 0x15d   : > { %v661_v44 = vadd.f32 %v660_v42, %v2569_v62  ;;  %v854_v45 = vadd.f32 %v853_v43, %v2571_v63  ;;  %v662_v46 = vpop.f32.mrb[57].mxu0  ;;  %v855_v47 = vpop.f32.mrb[57].mxu1  ;;  %1336 = vmatmul.mubr.bf16.gmra.mrb[116].mxu0 %v924_v38  ;;  %1497 = vmatmul.mubr.bf16.gmra.mrb[116].mxu1 %v926_v39 }
 0x15e   : > { %v663_v48 = vadd.f32 %v662_v46, %v2573_v0  ;;  %v856_v49 = vadd.f32 %v855_v47, %v2575_v1  ;;  %v664_v50 = vpop.f32.mrb[58].mxu0  ;;  %v857_v51 = vpop.f32.mrb[58].mxu1 }
 0x15f   : > { %1633 = vst [vmem:[%s2580_s9 + $0x380] sm:$0xff] %v661_v44  ;;  %1635 = vst [vmem:[%s2580_s9 + $0x390] sm:$0xff] %v854_v45  ;;  %v665_v52 = vadd.f32 %v664_v50, %v2569_v62  ;;  %v858_v53 = vadd.f32 %v857_v51, %v2571_v63  ;;  %v666_v54 = vpop.f32.mrb[59].mxu0  ;;  %v859_v55 = vpop.f32.mrb[59].mxu1 }
 0x160   : > { %1634 = vst [vmem:[%s2580_s9 + $0x388] sm:$0xff] %v663_v48  ;;  %1636 = vst [vmem:[%s2580_s9 + $0x398] sm:$0xff] %v856_v49  ;;  %v667_v56 = vadd.f32 %v666_v54, %v2573_v0  ;;  %v860_v57 = vadd.f32 %v859_v55, %v2575_v1 }
 0x161   : > { %v928_v58 = vpack.c.bf16 %v665_v52, %v661_v44  ;;  %1637 = vst [vmem:[%s2580_s9 + $0x3a0] sm:$0xff] %v665_v52  ;;  %v930_v59 = vpack.c.bf16 %v858_v53, %v854_v45  ;;  %1639 = vst [vmem:[%s2580_s9 + $0x3b0] sm:$0xff] %v858_v53 }
 0x162   : > { %v929_v60 = vpack.c.bf16 %v667_v56, %v663_v48  ;;  %1638 = vst [vmem:[%s2580_s9 + $0x3a8] sm:$0xff] %v667_v56  ;;  %v931_v61 = vpack.c.bf16 %v860_v57, %v856_v49  ;;  %1640 = vst [vmem:[%s2580_s9 + $0x3b8] sm:$0xff] %v860_v57 }
 0x164   : > { %v670_v2 = vpop.f32.mrb[60].mxu0  ;;  %v863_v3 = vpop.f32.mrb[60].mxu1  ;;  %1343 = vmatprep.mubr.bf16.mxu0 %v929_v60  ;;  %1504 = vmatprep.mubr.bf16.mxu1 %v931_v61 }
 0x165   : > { %v671_v4 = vadd.f32 %v670_v2, %v2569_v62  ;;  %v864_v5 = vadd.f32 %v863_v3, %v2571_v63  ;;  %v672_v6 = vpop.f32.mrb[61].mxu0  ;;  %v865_v7 = vpop.f32.mrb[61].mxu1  ;;  %1344 = vmatmul.mubr.bf16.gmra.mrb[120].mxu0 %v928_v58  ;;  %1505 = vmatmul.mubr.bf16.gmra.mrb[120].mxu1 %v930_v59 }
 0x166   : > { %v673_v8 = vadd.f32 %v672_v6, %v2573_v0  ;;  %v866_v9 = vadd.f32 %v865_v7, %v2575_v1  ;;  %v674_v10 = vpop.f32.mrb[62].mxu0  ;;  %v867_v11 = vpop.f32.mrb[62].mxu1 }
 0x167   : > { %1641 = vst [vmem:[%s2580_s9 + $0x3c0] sm:$0xff] %v671_v4  ;;  %1643 = vst [vmem:[%s2580_s9 + $0x3d0] sm:$0xff] %v864_v5  ;;  %v675_v12 = vadd.f32 %v674_v10, %v2569_v62  ;;  %v868_v13 = vadd.f32 %v867_v11, %v2571_v63  ;;  %v676_v14 = vpop.f32.mrb[63].mxu0  ;;  %v869_v15 = vpop.f32.mrb[63].mxu1 }
 0x168   : > { %1642 = vst [vmem:[%s2580_s9 + $0x3c8] sm:$0xff] %v673_v8  ;;  %1644 = vst [vmem:[%s2580_s9 + $0x3d8] sm:$0xff] %v866_v9  ;;  %v677_v16 = vadd.f32 %v676_v14, %v2573_v0  ;;  %v870_v17 = vadd.f32 %v869_v15, %v2575_v1  ;;  %v2842_v0 = vld [vmem:[%s2968_s4] ss:$0 sm:$0xff] }
 0x169   : > { %v932_v18 = vpack.c.bf16 %v675_v12, %v671_v4  ;;  %1645 = vst [vmem:[%s2580_s9 + $0x3e0] sm:$0xff] %v675_v12  ;;  %v934_v19 = vpack.c.bf16 %v868_v13, %v864_v5  ;;  %1647 = vst [vmem:[%s2580_s9 + $0x3f0] sm:$0xff] %v868_v13 }
 0x16a   : > { %v933_v20 = vpack.c.bf16 %v677_v16, %v673_v8  ;;  %1646 = vst [vmem:[%s2580_s9 + $0x3e8] sm:$0xff] %v677_v16  ;;  %v935_v21 = vpack.c.bf16 %v870_v17, %v866_v9  ;;  %1648 = vst [vmem:[%s2580_s9 + $0x3f8] sm:$0xff] %v870_v17 }
 0x16c   : > { %1351 = vmatprep.mubr.bf16.mxu0 %v933_v20  ;;  %1512 = vmatprep.mubr.bf16.mxu1 %v935_v21 }
 0x16d   : > { %1352 = vmatmul.mubr.bf16.gmra.mrb[124].mxu0 %v932_v18  ;;  %1513 = vmatmul.mubr.bf16.gmra.mrb[124].mxu1 %v934_v19 }
 0x1c8   : > { %v1913_v62 = vpop.f32.mrb[64].mxu0  ;;  %v2025_v63 = vpop.f32.mrb[64].mxu1 }
 0x1c9   : > { %v1914_v1 = vpop.f32.mrb[65].mxu0  ;;  %v2026_v22 = vpop.f32.mrb[65].mxu1 }
 0x1ca   : > { %v1915_v23 = vadd.f32 %v1914_v1, %v1913_v62  ;;  %v2027_v24 = vadd.f32 %v2026_v22, %v2025_v63  ;;  %v1916_v25 = vpop.f32.mrb[66].mxu0  ;;  %v2028_v26 = vpop.f32.mrb[66].mxu1 }
 0x1cb   : > { %v1917_v27 = vpop.f32.mrb[67].mxu0  ;;  %v2029_v28 = vpop.f32.mrb[67].mxu1 }
 0x1cc   : > { %v1234_v29 = vadd.f32 %v1915_v23, %v2842_v0  ;;  %v1918_v30 = vadd.f32 %v1917_v27, %v1916_v25  ;;  %v2030_v31 = vadd.f32 %v2029_v28, %v2028_v26 }
 0x1ce   : > { %v1395_v32 = vadd.f32 %v2027_v24, %v1234_v29  ;;  %v1237_v33 = vadd.f32 %v1918_v30, %v2842_v0 }
 0x1d0   : > { %1649 = vst [vmem:[%s2848_s15] sm:$0xff] %v1395_v32  ;;  %v1398_v34 = vadd.f32 %v2030_v31, %v1237_v33  ;;  %v1919_v35 = vpop.f32.mrb[68].mxu0  ;;  %v2031_v36 = vpop.f32.mrb[68].mxu1 }
 0x1d1   : > { %v1920_v37 = vpop.f32.mrb[69].mxu0  ;;  %v2032_v38 = vpop.f32.mrb[69].mxu1 }
 0x1d2   : > { %1650 = vst [vmem:[%s2848_s15 + $0x8] sm:$0xff] %v1398_v34  ;;  %v1921_v39 = vadd.f32 %v1920_v37, %v1919_v35  ;;  %v2033_v40 = vadd.f32 %v2032_v38, %v2031_v36  ;;  %v1922_v41 = vpop.f32.mrb[70].mxu0  ;;  %v2034_v42 = vpop.f32.mrb[70].mxu1 }
 0x1d3   : > { %v1923_v43 = vpop.f32.mrb[71].mxu0  ;;  %v2035_v44 = vpop.f32.mrb[71].mxu1 }
 0x1d4   : > { %v1242_v45 = vadd.f32 %v1921_v39, %v2842_v0  ;;  %v1924_v46 = vadd.f32 %v1923_v43, %v1922_v41  ;;  %v2036_v47 = vadd.f32 %v2035_v44, %v2034_v42 }
 0x1d6   : > { %v1403_v48 = vadd.f32 %v2033_v40, %v1242_v45  ;;  %v1245_v49 = vadd.f32 %v1924_v46, %v2842_v0 }
 0x1d8   : > { %1651 = vst [vmem:[%s2848_s15 + $0x10] sm:$0xff] %v1403_v48  ;;  %v1406_v50 = vadd.f32 %v2036_v47, %v1245_v49  ;;  %v1925_v51 = vpop.f32.mrb[72].mxu0  ;;  %v2037_v52 = vpop.f32.mrb[72].mxu1 }
 0x1d9   : > { %v1926_v53 = vpop.f32.mrb[73].mxu0  ;;  %v2038_v54 = vpop.f32.mrb[73].mxu1 }
 0x1da   : > { %1652 = vst [vmem:[%s2848_s15 + $0x18] sm:$0xff] %v1406_v50  ;;  %v1927_v55 = vadd.f32 %v1926_v53, %v1925_v51  ;;  %v2039_v56 = vadd.f32 %v2038_v54, %v2037_v52  ;;  %v1928_v57 = vpop.f32.mrb[74].mxu0  ;;  %v2040_v58 = vpop.f32.mrb[74].mxu1 }
 0x1db   : > { %v1929_v59 = vpop.f32.mrb[75].mxu0  ;;  %v2041_v60 = vpop.f32.mrb[75].mxu1 }
 0x1dc   : > { %v1250_v61 = vadd.f32 %v1927_v55, %v2842_v0  ;;  %v1930_v2 = vadd.f32 %v1929_v59, %v1928_v57  ;;  %v2042_v3 = vadd.f32 %v2041_v60, %v2040_v58 }
 0x1de   : > { %v1411_v4 = vadd.f32 %v2039_v56, %v1250_v61  ;;  %v1253_v5 = vadd.f32 %v1930_v2, %v2842_v0 }
 0x1e0   : > { %1653 = vst [vmem:[%s2848_s15 + $0x20] sm:$0xff] %v1411_v4  ;;  %v1414_v6 = vadd.f32 %v2042_v3, %v1253_v5  ;;  %v1931_v7 = vpop.f32.mrb[76].mxu0  ;;  %v2043_v8 = vpop.f32.mrb[76].mxu1 }
 0x1e1   : > { %v1932_v9 = vpop.f32.mrb[77].mxu0  ;;  %v2044_v10 = vpop.f32.mrb[77].mxu1 }
 0x1e2   : > { %1654 = vst [vmem:[%s2848_s15 + $0x28] sm:$0xff] %v1414_v6  ;;  %v1933_v11 = vadd.f32 %v1932_v9, %v1931_v7  ;;  %v2045_v12 = vadd.f32 %v2044_v10, %v2043_v8  ;;  %v1934_v13 = vpop.f32.mrb[78].mxu0  ;;  %v2046_v14 = vpop.f32.mrb[78].mxu1 }
 0x1e3   : > { %v1935_v15 = vpop.f32.mrb[79].mxu0  ;;  %v2047_v16 = vpop.f32.mrb[79].mxu1 }
 0x1e4   : > { %v1258_v17 = vadd.f32 %v1933_v11, %v2842_v0  ;;  %v1936_v18 = vadd.f32 %v1935_v15, %v1934_v13  ;;  %v2048_v19 = vadd.f32 %v2047_v16, %v2046_v14 }
 0x1e6   : > { %v1419_v20 = vadd.f32 %v2045_v12, %v1258_v17  ;;  %v1261_v21 = vadd.f32 %v1936_v18, %v2842_v0 }
 0x1e8   : > { %1655 = vst [vmem:[%s2848_s15 + $0x30] sm:$0xff] %v1419_v20  ;;  %v1422_v62 = vadd.f32 %v2048_v19, %v1261_v21  ;;  %v1937_v63 = vpop.f32.mrb[80].mxu0  ;;  %v2049_v1 = vpop.f32.mrb[80].mxu1 }
 0x1e9   : > { %v1938_v22 = vpop.f32.mrb[81].mxu0  ;;  %v2050_v23 = vpop.f32.mrb[81].mxu1 }
 0x1ea   : > { %1656 = vst [vmem:[%s2848_s15 + $0x38] sm:$0xff] %v1422_v62  ;;  %v1939_v24 = vadd.f32 %v1938_v22, %v1937_v63  ;;  %v2051_v25 = vadd.f32 %v2050_v23, %v2049_v1  ;;  %v1940_v26 = vpop.f32.mrb[82].mxu0  ;;  %v2052_v27 = vpop.f32.mrb[82].mxu1 }
 0x1eb   : > { %v1941_v28 = vpop.f32.mrb[83].mxu0  ;;  %v2053_v29 = vpop.f32.mrb[83].mxu1 }
 0x1ec   : > { %v1266_v30 = vadd.f32 %v1939_v24, %v2842_v0  ;;  %v1942_v31 = vadd.f32 %v1941_v28, %v1940_v26  ;;  %v2054_v32 = vadd.f32 %v2053_v29, %v2052_v27 }
 0x1ee   : > { %v1427_v33 = vadd.f32 %v2051_v25, %v1266_v30  ;;  %v1269_v34 = vadd.f32 %v1942_v31, %v2842_v0 }
 0x1f0   : > { %1657 = vst [vmem:[%s2848_s15 + $0x40] sm:$0xff] %v1427_v33  ;;  %v1430_v35 = vadd.f32 %v2054_v32, %v1269_v34  ;;  %v1943_v36 = vpop.f32.mrb[84].mxu0  ;;  %v2055_v37 = vpop.f32.mrb[84].mxu1 }
 0x1f1   : > { %v1944_v38 = vpop.f32.mrb[85].mxu0  ;;  %v2056_v39 = vpop.f32.mrb[85].mxu1 }
 0x1f2   : > { %1658 = vst [vmem:[%s2848_s15 + $0x48] sm:$0xff] %v1430_v35  ;;  %v1945_v40 = vadd.f32 %v1944_v38, %v1943_v36  ;;  %v2057_v41 = vadd.f32 %v2056_v39, %v2055_v37  ;;  %v1946_v42 = vpop.f32.mrb[86].mxu0  ;;  %v2058_v43 = vpop.f32.mrb[86].mxu1 }
 0x1f3   : > { %v1947_v44 = vpop.f32.mrb[87].mxu0  ;;  %v2059_v45 = vpop.f32.mrb[87].mxu1 }
 0x1f4   : > { %v1274_v46 = vadd.f32 %v1945_v40, %v2842_v0  ;;  %v1948_v47 = vadd.f32 %v1947_v44, %v1946_v42  ;;  %v2060_v48 = vadd.f32 %v2059_v45, %v2058_v43 }
 0x1f6   : > { %v1435_v49 = vadd.f32 %v2057_v41, %v1274_v46  ;;  %v1277_v50 = vadd.f32 %v1948_v47, %v2842_v0 }
 0x1f8   : > { %1659 = vst [vmem:[%s2848_s15 + $0x50] sm:$0xff] %v1435_v49  ;;  %v1438_v51 = vadd.f32 %v2060_v48, %v1277_v50  ;;  %v1949_v52 = vpop.f32.mrb[88].mxu0  ;;  %v2061_v53 = vpop.f32.mrb[88].mxu1 }
 0x1f9   : > { %v1950_v54 = vpop.f32.mrb[89].mxu0  ;;  %v2062_v55 = vpop.f32.mrb[89].mxu1 }
 0x1fa   : > { %1660 = vst [vmem:[%s2848_s15 + $0x58] sm:$0xff] %v1438_v51  ;;  %v1951_v56 = vadd.f32 %v1950_v54, %v1949_v52  ;;  %v2063_v57 = vadd.f32 %v2062_v55, %v2061_v53  ;;  %v1952_v58 = vpop.f32.mrb[90].mxu0  ;;  %v2064_v59 = vpop.f32.mrb[90].mxu1 }
 0x1fb   : > { %v1953_v60 = vpop.f32.mrb[91].mxu0  ;;  %v2065_v61 = vpop.f32.mrb[91].mxu1 }
 0x1fc   : > { %v1282_v2 = vadd.f32 %v1951_v56, %v2842_v0  ;;  %v1954_v3 = vadd.f32 %v1953_v60, %v1952_v58  ;;  %v2066_v4 = vadd.f32 %v2065_v61, %v2064_v59 }
 0x1fe   : > { %v1443_v5 = vadd.f32 %v2063_v57, %v1282_v2  ;;  %v1285_v6 = vadd.f32 %v1954_v3, %v2842_v0 }
 0x200   : > { %1661 = vst [vmem:[%s2848_s15 + $0x60] sm:$0xff] %v1443_v5  ;;  %v1446_v7 = vadd.f32 %v2066_v4, %v1285_v6  ;;  %v1955_v8 = vpop.f32.mrb[92].mxu0  ;;  %v2067_v9 = vpop.f32.mrb[92].mxu1 }
 0x201   : > { %v1956_v10 = vpop.f32.mrb[93].mxu0  ;;  %v2068_v11 = vpop.f32.mrb[93].mxu1 }
 0x202   : > { %1662 = vst [vmem:[%s2848_s15 + $0x68] sm:$0xff] %v1446_v7  ;;  %v1957_v12 = vadd.f32 %v1956_v10, %v1955_v8  ;;  %v2069_v13 = vadd.f32 %v2068_v11, %v2067_v9  ;;  %v1958_v14 = vpop.f32.mrb[94].mxu0  ;;  %v2070_v15 = vpop.f32.mrb[94].mxu1 }
 0x203   : > { %v1959_v16 = vpop.f32.mrb[95].mxu0  ;;  %v2071_v17 = vpop.f32.mrb[95].mxu1 }
 0x204   : > { %v1290_v18 = vadd.f32 %v1957_v12, %v2842_v0  ;;  %v1960_v19 = vadd.f32 %v1959_v16, %v1958_v14  ;;  %v2072_v20 = vadd.f32 %v2071_v17, %v2070_v15 }
 0x206   : > { %v1451_v21 = vadd.f32 %v2069_v13, %v1290_v18  ;;  %v1293_v62 = vadd.f32 %v1960_v19, %v2842_v0 }
 0x208   : > { %1663 = vst [vmem:[%s2848_s15 + $0x70] sm:$0xff] %v1451_v21  ;;  %v1454_v63 = vadd.f32 %v2072_v20, %v1293_v62  ;;  %v1961_v1 = vpop.f32.mrb[96].mxu0  ;;  %v2073_v22 = vpop.f32.mrb[96].mxu1 }
 0x209   : > { %v1962_v23 = vpop.f32.mrb[97].mxu0  ;;  %v2074_v24 = vpop.f32.mrb[97].mxu1 }
 0x20a   : > { %1664 = vst [vmem:[%s2848_s15 + $0x78] sm:$0xff] %v1454_v63  ;;  %v1963_v25 = vadd.f32 %v1962_v23, %v1961_v1  ;;  %v2075_v26 = vadd.f32 %v2074_v24, %v2073_v22  ;;  %v1964_v27 = vpop.f32.mrb[98].mxu0  ;;  %v2076_v28 = vpop.f32.mrb[98].mxu1 }
 0x20b   : > { %v1965_v29 = vpop.f32.mrb[99].mxu0  ;;  %v2077_v30 = vpop.f32.mrb[99].mxu1 }
 0x20c   : > { %v1298_v31 = vadd.f32 %v1963_v25, %v2842_v0  ;;  %v1966_v32 = vadd.f32 %v1965_v29, %v1964_v27  ;;  %v2078_v33 = vadd.f32 %v2077_v30, %v2076_v28 }
 0x20e   : > { %v1459_v34 = vadd.f32 %v2075_v26, %v1298_v31  ;;  %v1301_v35 = vadd.f32 %v1966_v32, %v2842_v0 }
 0x210   : > { %1665 = vst [vmem:[%s2848_s15 + $0x80] sm:$0xff] %v1459_v34  ;;  %v1462_v36 = vadd.f32 %v2078_v33, %v1301_v35  ;;  %v1967_v37 = vpop.f32.mrb[100].mxu0  ;;  %v2079_v38 = vpop.f32.mrb[100].mxu1 }
 0x211   : > { %v1968_v39 = vpop.f32.mrb[101].mxu0  ;;  %v2080_v40 = vpop.f32.mrb[101].mxu1 }
 0x212   : > { %1666 = vst [vmem:[%s2848_s15 + $0x88] sm:$0xff] %v1462_v36  ;;  %v1969_v41 = vadd.f32 %v1968_v39, %v1967_v37  ;;  %v2081_v42 = vadd.f32 %v2080_v40, %v2079_v38  ;;  %v1970_v43 = vpop.f32.mrb[102].mxu0  ;;  %v2082_v44 = vpop.f32.mrb[102].mxu1 }
 0x213   : > { %v1971_v45 = vpop.f32.mrb[103].mxu0  ;;  %v2083_v46 = vpop.f32.mrb[103].mxu1 }
 0x214   : > { %v1306_v47 = vadd.f32 %v1969_v41, %v2842_v0  ;;  %v1972_v48 = vadd.f32 %v1971_v45, %v1970_v43  ;;  %v2084_v49 = vadd.f32 %v2083_v46, %v2082_v44 }
 0x216   : > { %v1467_v50 = vadd.f32 %v2081_v42, %v1306_v47  ;;  %v1309_v51 = vadd.f32 %v1972_v48, %v2842_v0 }
 0x218   : > { %1667 = vst [vmem:[%s2848_s15 + $0x90] sm:$0xff] %v1467_v50  ;;  %v1470_v52 = vadd.f32 %v2084_v49, %v1309_v51  ;;  %v1973_v53 = vpop.f32.mrb[104].mxu0  ;;  %v2085_v54 = vpop.f32.mrb[104].mxu1 }
 0x219   : > { %v1974_v55 = vpop.f32.mrb[105].mxu0  ;;  %v2086_v56 = vpop.f32.mrb[105].mxu1 }
 0x21a   : > { %1668 = vst [vmem:[%s2848_s15 + $0x98] sm:$0xff] %v1470_v52  ;;  %v1975_v57 = vadd.f32 %v1974_v55, %v1973_v53  ;;  %v2087_v58 = vadd.f32 %v2086_v56, %v2085_v54  ;;  %v1976_v59 = vpop.f32.mrb[106].mxu0  ;;  %v2088_v60 = vpop.f32.mrb[106].mxu1 }
 0x21b   : > { %v1977_v61 = vpop.f32.mrb[107].mxu0  ;;  %v2089_v2 = vpop.f32.mrb[107].mxu1 }
 0x21c   : > { %v1314_v3 = vadd.f32 %v1975_v57, %v2842_v0  ;;  %v1978_v4 = vadd.f32 %v1977_v61, %v1976_v59  ;;  %v2090_v5 = vadd.f32 %v2089_v2, %v2088_v60 }
 0x21e   : > { %v1475_v6 = vadd.f32 %v2087_v58, %v1314_v3  ;;  %v1317_v7 = vadd.f32 %v1978_v4, %v2842_v0 }
 0x220   : > { %1669 = vst [vmem:[%s2848_s15 + $0xa0] sm:$0xff] %v1475_v6  ;;  %v1478_v8 = vadd.f32 %v2090_v5, %v1317_v7  ;;  %v1979_v9 = vpop.f32.mrb[108].mxu0  ;;  %v2091_v10 = vpop.f32.mrb[108].mxu1 }
 0x221   : > { %v1980_v11 = vpop.f32.mrb[109].mxu0  ;;  %v2092_v12 = vpop.f32.mrb[109].mxu1 }
 0x222   : > { %1670 = vst [vmem:[%s2848_s15 + $0xa8] sm:$0xff] %v1478_v8  ;;  %v1981_v13 = vadd.f32 %v1980_v11, %v1979_v9  ;;  %v2093_v14 = vadd.f32 %v2092_v12, %v2091_v10  ;;  %v1982_v15 = vpop.f32.mrb[110].mxu0  ;;  %v2094_v16 = vpop.f32.mrb[110].mxu1 }
 0x223   : > { %v1983_v17 = vpop.f32.mrb[111].mxu0  ;;  %v2095_v18 = vpop.f32.mrb[111].mxu1 }
 0x224   : > { %v1322_v19 = vadd.f32 %v1981_v13, %v2842_v0  ;;  %v1984_v20 = vadd.f32 %v1983_v17, %v1982_v15  ;;  %v2096_v21 = vadd.f32 %v2095_v18, %v2094_v16 }
 0x226   : > { %v1483_v62 = vadd.f32 %v2093_v14, %v1322_v19  ;;  %v1325_v63 = vadd.f32 %v1984_v20, %v2842_v0 }
 0x228   : > { %1671 = vst [vmem:[%s2848_s15 + $0xb0] sm:$0xff] %v1483_v62  ;;  %v1486_v1 = vadd.f32 %v2096_v21, %v1325_v63  ;;  %v1985_v22 = vpop.f32.mrb[112].mxu0  ;;  %v2097_v23 = vpop.f32.mrb[112].mxu1 }
 0x229   : > { %v1986_v24 = vpop.f32.mrb[113].mxu0  ;;  %v2098_v25 = vpop.f32.mrb[113].mxu1 }
 0x22a   : > { %1672 = vst [vmem:[%s2848_s15 + $0xb8] sm:$0xff] %v1486_v1  ;;  %v1987_v26 = vadd.f32 %v1986_v24, %v1985_v22  ;;  %v2099_v27 = vadd.f32 %v2098_v25, %v2097_v23  ;;  %v1988_v28 = vpop.f32.mrb[114].mxu0  ;;  %v2100_v29 = vpop.f32.mrb[114].mxu1 }
 0x22b   : > { %v1989_v30 = vpop.f32.mrb[115].mxu0  ;;  %v2101_v31 = vpop.f32.mrb[115].mxu1 }
 0x22c   : > { %v1330_v32 = vadd.f32 %v1987_v26, %v2842_v0  ;;  %v1990_v33 = vadd.f32 %v1989_v30, %v1988_v28  ;;  %v2102_v34 = vadd.f32 %v2101_v31, %v2100_v29 }
 0x22e   : > { %v1491_v35 = vadd.f32 %v2099_v27, %v1330_v32  ;;  %v1333_v36 = vadd.f32 %v1990_v33, %v2842_v0 }
 0x230   : > { %1673 = vst [vmem:[%s2848_s15 + $0xc0] sm:$0xff] %v1491_v35  ;;  %v1494_v37 = vadd.f32 %v2102_v34, %v1333_v36  ;;  %v1991_v38 = vpop.f32.mrb[116].mxu0  ;;  %v2103_v39 = vpop.f32.mrb[116].mxu1 }
 0x231   : > { %v1992_v40 = vpop.f32.mrb[117].mxu0  ;;  %v2104_v41 = vpop.f32.mrb[117].mxu1 }
 0x232   : > { %1674 = vst [vmem:[%s2848_s15 + $0xc8] sm:$0xff] %v1494_v37  ;;  %v1993_v42 = vadd.f32 %v1992_v40, %v1991_v38  ;;  %v2105_v43 = vadd.f32 %v2104_v41, %v2103_v39  ;;  %v1994_v44 = vpop.f32.mrb[118].mxu0  ;;  %v2106_v45 = vpop.f32.mrb[118].mxu1 }
 0x233   : > { %v1995_v46 = vpop.f32.mrb[119].mxu0  ;;  %v2107_v47 = vpop.f32.mrb[119].mxu1 }
 0x234   : > { %v1338_v48 = vadd.f32 %v1993_v42, %v2842_v0  ;;  %v1996_v49 = vadd.f32 %v1995_v46, %v1994_v44  ;;  %v2108_v50 = vadd.f32 %v2107_v47, %v2106_v45 }
 0x236   : > { %v1499_v51 = vadd.f32 %v2105_v43, %v1338_v48  ;;  %v1341_v52 = vadd.f32 %v1996_v49, %v2842_v0 }
 0x238   : > { %1675 = vst [vmem:[%s2848_s15 + $0xd0] sm:$0xff] %v1499_v51  ;;  %v1502_v53 = vadd.f32 %v2108_v50, %v1341_v52  ;;  %v1997_v54 = vpop.f32.mrb[120].mxu0  ;;  %v2109_v55 = vpop.f32.mrb[120].mxu1 }
 0x239   : > { %v1998_v56 = vpop.f32.mrb[121].mxu0  ;;  %v2110_v57 = vpop.f32.mrb[121].mxu1 }
 0x23a   : > { %1676 = vst [vmem:[%s2848_s15 + $0xd8] sm:$0xff] %v1502_v53  ;;  %v1999_v58 = vadd.f32 %v1998_v56, %v1997_v54  ;;  %v2111_v59 = vadd.f32 %v2110_v57, %v2109_v55  ;;  %v2000_v60 = vpop.f32.mrb[122].mxu0  ;;  %v2112_v61 = vpop.f32.mrb[122].mxu1 }
 0x23b   : > { %v2001_v2 = vpop.f32.mrb[123].mxu0  ;;  %v2113_v3 = vpop.f32.mrb[123].mxu1 }
 0x23c   : > { %v1346_v4 = vadd.f32 %v1999_v58, %v2842_v0  ;;  %v2002_v5 = vadd.f32 %v2001_v2, %v2000_v60  ;;  %v2114_v6 = vadd.f32 %v2113_v3, %v2112_v61 }
 0x23e   : > { %v1507_v7 = vadd.f32 %v2111_v59, %v1346_v4  ;;  %v1349_v8 = vadd.f32 %v2002_v5, %v2842_v0 }
 0x240   : > { %1677 = vst [vmem:[%s2848_s15 + $0xe0] sm:$0xff] %v1507_v7  ;;  %v1510_v9 = vadd.f32 %v2114_v6, %v1349_v8  ;;  %v2003_v10 = vpop.f32.mrb[124].mxu0  ;;  %v2115_v11 = vpop.f32.mrb[124].mxu1 }
 0x241   : > { %v2004_v12 = vpop.f32.mrb[125].mxu0  ;;  %v2116_v13 = vpop.f32.mrb[125].mxu1 }
 0x242   : > { %1678 = vst [vmem:[%s2848_s15 + $0xe8] sm:$0xff] %v1510_v9  ;;  %v2005_v14 = vadd.f32 %v2004_v12, %v2003_v10  ;;  %v2117_v15 = vadd.f32 %v2116_v13, %v2115_v11  ;;  %v2006_v16 = vpop.f32.mrb[126].mxu0  ;;  %v2118_v17 = vpop.f32.mrb[126].mxu1 }
 0x243   : > { %v2007_v18 = vpop.f32.mrb[127].mxu0  ;;  %v2119_v19 = vpop.f32.mrb[127].mxu1 }
 0x244   : > { %v1354_v20 = vadd.f32 %v2005_v14, %v2842_v0  ;;  %v2008_v21 = vadd.f32 %v2007_v18, %v2006_v16  ;;  %v2120_v62 = vadd.f32 %v2119_v19, %v2118_v17 }
 0x246   : > { %v1515_v63 = vadd.f32 %v2117_v15, %v1354_v20  ;;  %v1357_v1 = vadd.f32 %v2008_v21, %v2842_v0 }
 0x248   : > { %1679 = vst [vmem:[%s2848_s15 + $0xf0] sm:$0xff] %v1515_v63  ;;  %v1518_v22 = vadd.f32 %v2120_v62, %v1357_v1 }
 0x24a   : > { %1680 = vst [vmem:[%s2848_s15 + $0xf8] sm:$0xff] %v1518_v22 }
 0x24b   : > { %2230 = shalt.err (!%p2227_p3)
}
 0x24c   : > { %s2231_s9 = scalar_lea.hbm %s2915_s20, 4096  ;;  %s2235_s12 = scalar_lea.hbm %s2970_s6, 8192 }
 0x24d   : > { %p2232_p4 = scmp.ne.s32.totalorder %s2915_s20, %s2231_s9  ;;  %p2236_p9 = scmp.lt.u32.totalorder %s2915_s20, %s2970_s6 }
 0x24e   : > { %p2237_p10 = scmp.lt.u32.totalorder %s2235_s12, %s2231_s9  ;;  %p2239_p12 = scmp.lt.u32.totalorder %s2231_s9, %s2915_s20 }
 0x24f   : > { %p2233_p7 = pnand %p2232_p4, %p2358_p5 }
 0x250   : > { %p2238_p11 = por %p2237_p10, %p2236_p9 }
 0x251   : > { %p2234_p8 = pneg %p2233_p7 }
 0x252   : > { %p2240_p13 = por %p2239_p12, %p2238_p11 }
 0x254   : > { %p2241_p0 = pnand %p2240_p13, %p2234_p8 }
 0x256   : > { %2244 = shalt.err (!%p2241_p0)
}
 0x257   : > { %s2283_s16 = smov 128   ;;  %s2284_s18 = smov 8  }
 0x258   : > { %2121 = dma.vmem_to_hbm [thread:$0]  (%p2358_p5), %s2917_s17, 4096, %s2915_s20, %s2923_s26, %s2283_s16, %s2283_s16, %s2284_s18  }
 0x259 PF: > { %p2127_p1 = scmp.ge.s32.totalorder %s2279_s24, 2  ;;  %s1729_s19 = sand.u32 1, %s2267_s21  }
 0x25a   : > { %s1730_s25 = scalar_lea.sflag [#allocation3], %s1729_s19 }
 0x25b   : > { %p2124_p2 = pnand %p2127_p1, %p2362_p6 }
 0x25d   : > { %2262 = dma.done.wait (!%p2124_p2), %s1730_s25, 4096  }
 0x25e   : > { %2264 = vsyncadd (!%p2124_p2), %s1730_s25, 4294963200  ;;  %p17_p3 = scmp.ge.s32.totalorder %s2345_s27, 4   ;;  %s2973_s21 = smov %s2271_s22 }
 0x25f   : > { %s2974_s22 = smov %s2275_s23  ;;  %s2975_s23 = smov %s2356_s30 }
 0x260   : > { %s2976_s24 = smov %s2345_s27  ;;  %19 = sbr.rel (!%p17_p3) target bundleno = 3 (0x3), region = 87 }
 0x267   :  { %1735 = vsyncpa [#allocation3], 1 }
 0x268   :  { %1737 = vsyncpa [#allocation3 + $0x1], 1 }

</bundles_post_ra>
